<compile_context>
chip_gen: v7x
topology: tpu7x:2x2x1
jax: 0.10.0
libtpu: 0.0.40
codegen_flags: <defaults>
</compile_context>

<pallas_src>
import jax
import jax.numpy as jnp
from jax.experimental import pallas as pl
from jax.experimental.pallas import tpu as pltpu


def _round_up(n: int, m: int) -> int:
    return ((n + m - 1) // m) * m


# ---------------------------------------------------------------------------
# Kernel 1: fused conv (as im2col matmul) + bias + ReLU + 2x2 max-pool.
#   w_ref : [Cout_p, Kp]        (VMEM-resident, constant across grid)
#   b_ref : [Cout_p, 1]
#   p_ref : [4, Kp, NT]          4 = pool-window members (di, dj)
#   o_ref : [Cout_p, NT]         pooled+ReLU'd conv output, lane-dense
# ---------------------------------------------------------------------------
def _conv_relu_pool_kernel(w_ref, b_ref, p_ref, o_ref):
    w = w_ref[...]
    m = jnp.dot(w, p_ref[0], preferred_element_type=jnp.float32)
    for widx in (1, 2, 3):  # static unroll over the 2x2 pool window
        m = jnp.maximum(
            m, jnp.dot(w, p_ref[widx], preferred_element_type=jnp.float32)
        )
    # bias added once after the max (bias is constant within a pool window);
    # ReLU last == PyTorch's relu-then-maxpool (ReLU is monotone).
    o_ref[...] = jnp.maximum(m + b_ref[...], 0.0)


def conv_relu_pool(x, w, b, *, max_lane_tile: int = 2048):
    """x: [B, Cin, H, W] f32, w: [Cout, Cin, kh, kw], b: [Cout].

    Returns max_pool2d(relu(conv2d(x, w, b)), 2) as [B, Cout, Hp, Wp].
    """
    B, Cin, H, W = x.shape
    Cout, _, kh, kw = w.shape
    Ho, Wo = H - kh + 1, W - kw + 1
    Hp, Wp = Ho // 2, Wo // 2          # floor pooling (matches F.max_pool2d)
    K = Cin * kh * kw
    N = B * Hp * Wp

    # --- im2col glue (plain JAX data movement), grouped by pool window ----
    # patch row order is (cin, kh, kw) == torch weight.reshape(Cout, -1).
    patches = [x[:, :, i:i + Ho, j:j + Wo] for i in range(kh) for j in range(kw)]
    p = jnp.stack(patches, axis=2)                    # [B, Cin, kh*kw, Ho, Wo]
    p = p.reshape(B, K, Ho, Wo)[:, :, :2 * Hp, :2 * Wp]
    p = p.reshape(B, K, Hp, 2, Wp, 2)                 # [..., ip, di, jp, dj]
    p = p.transpose(3, 5, 1, 0, 2, 4).reshape(4, K, N)  # [(di,dj), K, (b,ip,jp)]

    # --- padding: K -> sublane multiple, columns -> 128-lane multiple -----
    Kp = _round_up(K, 8)
    Cout_p = _round_up(Cout, 8)
    N_128 = _round_up(N, 128)
    if N_128 <= max_lane_tile:
        NT, N_pad = N_128, N_128
    else:
        NT = max_lane_tile                            # multiple of 128
        N_pad = _round_up(N, NT)

    p_pad = jnp.pad(p, ((0, 0), (0, Kp - K), (0, N_pad - N)))
    w_mat = jnp.pad(w.reshape(Cout, K), ((0, Cout_p - Cout), (0, Kp - K)))
    b_col = jnp.pad(b.reshape(Cout, 1), ((0, Cout_p - Cout), (0, 0)))

    out = pl.pallas_call(
        _conv_relu_pool_kernel,
        out_shape=jax.ShapeDtypeStruct((Cout_p, N_pad), jnp.float32),
        grid=(N_pad // NT,),
        in_specs=[
            pl.BlockSpec((Cout_p, Kp), lambda i: (0, 0)),   # weights resident
            pl.BlockSpec((Cout_p, 1), lambda i: (0, 0)),    # bias resident
            pl.BlockSpec((4, Kp, NT), lambda i: (0, 0, i)), # patch lane tiles
        ],
        out_specs=pl.BlockSpec((Cout_p, NT), lambda i: (0, i)),
        compiler_params=pltpu.CompilerParams(
            dimension_semantics=("parallel",),
        ),
    )(w_mat, b_col, p_pad)

    out = out[:Cout, :N].reshape(Cout, B, Hp, Wp)
    return out.transpose(1, 0, 2, 3)                  # back to [B, Cout, Hp, Wp]


# ---------------------------------------------------------------------------
# Kernel 2: fused fc1 -> ReLU -> fc2 -> ReLU -> fc3 (single pallas_call).
# Activations are [features, batch] so batch is the lane axis; all weights
# stay resident in VMEM; intermediates never leave vregs/VMEM.
# ---------------------------------------------------------------------------
def _fc_fused_kernel(x_ref, w1_ref, b1_ref, w2_ref, b2_ref, w3_ref, b3_ref, o_ref):
    h = jnp.maximum(
        jnp.dot(w1_ref[...], x_ref[...], preferred_element_type=jnp.float32)
        + b1_ref[...], 0.0)
    h = jnp.maximum(
        jnp.dot(w2_ref[...], h, preferred_element_type=jnp.float32)
        + b2_ref[...], 0.0)
    o_ref[...] = (
        jnp.dot(w3_ref[...], h, preferred_element_type=jnp.float32) + b3_ref[...]
    )


def fc_stack(x_bchw, w1, b1, w2, b2, w3, b3, *, max_batch_tile: int = 2048):
    """x_bchw: [B, C, H, W]; torch-style flatten to (c, h, w) then 3 Linears."""
    B, C, H, W = x_bchw.shape
    F_in = C * H * W
    D1, D2, D3 = w1.shape[0], w2.shape[0], w3.shape[0]

    # torch x.view(B, -1) flattens (c, h, w); put features on sublanes,
    # batch on lanes (lane-dense output / MXU N side).
    xf = jnp.transpose(x_bchw, (1, 2, 3, 0)).reshape(F_in, B)

    F_p = _round_up(F_in, 8)
    B_128 = _round_up(B, 128)
    if B_128 <= max_batch_tile:
        BT, B_pad = B_128, B_128
    else:
        BT = max_batch_tile
        B_pad = _round_up(B, BT)

    xf = jnp.pad(xf, ((0, F_p - F_in), (0, B_pad - B)))
    w1p = jnp.pad(w1, ((0, 0), (0, F_p - F_in)))

    out = pl.pallas_call(
        _fc_fused_kernel,
        out_shape=jax.ShapeDtypeStruct((D3, B_pad), jnp.float32),
        grid=(B_pad // BT,),
        in_specs=[
            pl.BlockSpec((F_p, BT), lambda i: (0, i)),   # activations: batch tiles
            pl.BlockSpec((D1, F_p), lambda i: (0, 0)),   # fc1 weight resident
            pl.BlockSpec((D1, 1), lambda i: (0, 0)),
            pl.BlockSpec((D2, D1), lambda i: (0, 0)),    # fc2 weight resident
            pl.BlockSpec((D2, 1), lambda i: (0, 0)),
            pl.BlockSpec((D3, D2), lambda i: (0, 0)),    # fc3 weight resident
            pl.BlockSpec((D3, 1), lambda i: (0, 0)),
        ],
        out_specs=pl.BlockSpec((D3, BT), lambda i: (0, i)),
        compiler_params=pltpu.CompilerParams(
            dimension_semantics=("parallel",),
        ),
    )(xf, w1p, b1.reshape(D1, 1), w2, b2.reshape(D2, 1), w3, b3.reshape(D3, 1))

    return out[:, :B].T                                  # [B, 10]


# ---------------------------------------------------------------------------
# Full LeNet forward (matches the PyTorch module).
# ---------------------------------------------------------------------------
def lenet_forward(params, x):
    w1, b1, w2, b2, wf1, bf1, wf2, bf2, wf3, bf3 = params
    x = conv_relu_pool(x, w1, b1)      # conv1 + ReLU + pool
    x = conv_relu_pool(x, w2, b2)      # conv2 + ReLU + pool
    return fc_stack(x, wf1, bf1, wf2, bf2, wf3, bf3)


lenet_forward = jax.jit(lenet_forward)


# ---------------------------------------------------------------------------
# Pure-JAX reference (for a correctness sanity check).
# ---------------------------------------------------------------------------
def _ref_pool(y):
    B, C, H, W = y.shape
    Hp, Wp = H // 2, W // 2
    y = y[:, :, :2 * Hp, :2 * Wp].reshape(B, C, Hp, 2, Wp, 2)
    return y.max(axis=(3, 5))


def _reference_forward(params, x):
    w1, b1, w2, b2, wf1, bf1, wf2, bf2, wf3, bf3 = params
    dn = ("NCHW", "OIHW", "NCHW")
    y = jax.lax.conv_general_dilated(x, w1, (1, 1), "VALID", dimension_numbers=dn)
    y = _ref_pool(jnp.maximum(y + b1[None, :, None, None], 0.0))
    y = jax.lax.conv_general_dilated(y, w2, (1, 1), "VALID", dimension_numbers=dn)
    y = _ref_pool(jnp.maximum(y + b2[None, :, None, None], 0.0))
    yf = y.reshape(y.shape[0], -1)
    yf = jnp.maximum(yf @ wf1.T + bf1, 0.0)
    yf = jnp.maximum(yf @ wf2.T + bf2, 0.0)
    return yf @ wf3.T + bf3


if __name__ == "__main__":
    key = jax.random.PRNGKey(0)
    ks = jax.random.split(key, 11)
    B = 2
    # 28x28 input is implied by the module (16*5*5 = 400 features into fc1).
    x = jax.random.normal(ks[0], (B, 1, 28, 28), jnp.float32)
    s = 0.1
    params = (
        s * jax.random.normal(ks[1], (6, 1, 3, 3), jnp.float32),
        s * jax.random.normal(ks[2], (6,), jnp.float32),
        s * jax.random.normal(ks[3], (16, 6, 3, 3), jnp.float32),
        s * jax.random.normal(ks[4], (16,), jnp.float32),
        s * jax.random.normal(ks[5], (120, 400), jnp.float32),
        s * jax.random.normal(ks[6], (120,), jnp.float32),
        s * jax.random.normal(ks[7], (84, 120), jnp.float32),
        s * jax.random.normal(ks[8], (84,), jnp.float32),
        s * jax.random.normal(ks[9], (10, 84), jnp.float32),
        s * jax.random.normal(ks[10], (10,), jnp.float32),
    )

    out = jax.block_until_ready(lenet_forward(params, x))
    ref = jax.block_until_ready(_reference_forward(params, x))

    assert out.shape == (B, 10), out.shape
    if not bool(jnp.allclose(out, ref, atol=1e-2, rtol=1e-2)):
        raise AssertionError(
            f"mismatch vs reference, max abs err = {float(jnp.max(jnp.abs(out - ref)))}"
        )
    print("KERNEL_OK")
</pallas_src>

<mosaic_0001>
module attributes {stable_mosaic.version = 11 : i64} {
  func.func @_conv_relu_pool_kernel(%arg0: i32, %arg1: memref<8x16xf32, #tpu.memory_space<vmem>>, %arg2: memref<8x1xf32, #tpu.memory_space<vmem>>, %arg3: memref<4x16x384xf32, #tpu.memory_space<vmem>>, %arg4: memref<8x384xf32, #tpu.memory_space<vmem>>) attributes {dimension_semantics = [#tpu.dimension_semantics<parallel>], iteration_bounds = array<i64: 1>, scalar_prefetch = 0 : i64, scratch_operands = 0 : i64, tpu.core_type = #tpu.core_type<tc>, window_params = [{pipeline_mode = #tpu.pipeline_mode<synchronous>, transform_indices = @transform_0, window_bounds = array<i64: 8, 16>}, {pipeline_mode = #tpu.pipeline_mode<synchronous>, transform_indices = @transform_1, window_bounds = array<i64: 8, 1>}, {transform_indices = @transform_2, window_bounds = array<i64: 4, 16, 384>}, {transform_indices = @transform_3, window_bounds = array<i64: 8, 384>}]} {
    %c0 = arith.constant 0 : index
    %c0_0 = arith.constant 0 : index
    %0 = vector.load %arg1[%c0, %c0_0] : memref<8x16xf32, #tpu.memory_space<vmem>>, vector<8x16xf32>
    %c0_1 = arith.constant 0 : index
    %c0_2 = arith.constant 0 : index
    %c0_3 = arith.constant 0 : index
    %1 = vector.load %arg3[%c0_1, %c0_2, %c0_3] : memref<4x16x384xf32, #tpu.memory_space<vmem>>, vector<1x16x384xf32>
    %2 = vector.shape_cast %1 : vector<1x16x384xf32> to vector<16x384xf32>
    %cst = arith.constant dense<0.000000e+00> : vector<8x384xf32>
    %3 = tpu.matmul %0, %2, %cst {dimension_numbers = #tpu.dot_dimension_numbers<[1], [0], [0], [1], [0, 0, 1, 1], [], []>} : vector<8x16xf32>, vector<16x384xf32>, vector<8x384xf32> -> vector<8x384xf32>
    %c1 = arith.constant 1 : index
    %c0_4 = arith.constant 0 : index
    %c0_5 = arith.constant 0 : index
    %4 = vector.load %arg3[%c1, %c0_4, %c0_5] : memref<4x16x384xf32, #tpu.memory_space<vmem>>, vector<1x16x384xf32>
    %5 = vector.shape_cast %4 : vector<1x16x384xf32> to vector<16x384xf32>
    %cst_6 = arith.constant dense<0.000000e+00> : vector<8x384xf32>
    %6 = tpu.matmul %0, %5, %cst_6 {dimension_numbers = #tpu.dot_dimension_numbers<[1], [0], [0], [1], [0, 0, 1, 1], [], []>} : vector<8x16xf32>, vector<16x384xf32>, vector<8x384xf32> -> vector<8x384xf32>
    %7 = arith.maximumf %3, %6 : vector<8x384xf32>
    %c2 = arith.constant 2 : index
    %c0_7 = arith.constant 0 : index
    %c0_8 = arith.constant 0 : index
    %8 = vector.load %arg3[%c2, %c0_7, %c0_8] : memref<4x16x384xf32, #tpu.memory_space<vmem>>, vector<1x16x384xf32>
    %9 = vector.shape_cast %8 : vector<1x16x384xf32> to vector<16x384xf32>
    %cst_9 = arith.constant dense<0.000000e+00> : vector<8x384xf32>
    %10 = tpu.matmul %0, %9, %cst_9 {dimension_numbers = #tpu.dot_dimension_numbers<[1], [0], [0], [1], [0, 0, 1, 1], [], []>} : vector<8x16xf32>, vector<16x384xf32>, vector<8x384xf32> -> vector<8x384xf32>
    %11 = arith.maximumf %7, %10 : vector<8x384xf32>
    %c3 = arith.constant 3 : index
    %c0_10 = arith.constant 0 : index
    %c0_11 = arith.constant 0 : index
    %12 = vector.load %arg3[%c3, %c0_10, %c0_11] : memref<4x16x384xf32, #tpu.memory_space<vmem>>, vector<1x16x384xf32>
    %13 = vector.shape_cast %12 : vector<1x16x384xf32> to vector<16x384xf32>
    %cst_12 = arith.constant dense<0.000000e+00> : vector<8x384xf32>
    %14 = tpu.matmul %0, %13, %cst_12 {dimension_numbers = #tpu.dot_dimension_numbers<[1], [0], [0], [1], [0, 0, 1, 1], [], []>} : vector<8x16xf32>, vector<16x384xf32>, vector<8x384xf32> -> vector<8x384xf32>
    %15 = arith.maximumf %11, %14 : vector<8x384xf32>
    %c0_13 = arith.constant 0 : index
    %c0_14 = arith.constant 0 : index
    %16 = vector.load %arg2[%c0_13, %c0_14] : memref<8x1xf32, #tpu.memory_space<vmem>>, vector<8x1xf32>
    %17 = vector.broadcast %16 : vector<8x1xf32> to vector<8x384xf32>
    %18 = arith.addf %15, %17 : vector<8x384xf32>
    %cst_15 = arith.constant 0.000000e+00 : f32
    %19 = vector.broadcast %cst_15 : f32 to vector<8x384xf32>
    %20 = arith.maximumf %18, %19 : vector<8x384xf32>
    %c0_16 = arith.constant 0 : index
    %c0_17 = arith.constant 0 : index
    %21 = vector.load %arg4[%c0_16, %c0_17] : memref<8x384xf32, #tpu.memory_space<vmem>>, vector<8x384xf32>
    tpu.vector_store %arg4[%c0_16, %c0_17], %20 {strides = array<i32>} : memref<8x384xf32, #tpu.memory_space<vmem>>, vector<8x384xf32>,
    return
  }
  func.func @transform_0(%arg0: i32) -> (i32, i32) {
    %c0_i32 = arith.constant 0 : i32
    %c0_i32_0 = arith.constant 0 : i32
    %c0_i32_1 = arith.constant 0 : i32
    return %c0_i32, %c0_i32_0 : i32, i32
  }
  func.func @transform_1(%arg0: i32) -> (i32, i32) {
    %c0_i32 = arith.constant 0 : i32
    %c0_i32_0 = arith.constant 0 : i32
    %c0_i32_1 = arith.constant 0 : i32
    return %c0_i32, %c0_i32_0 : i32, i32
  }
  func.func @transform_2(%arg0: i32) -> (i32, i32, i32) {
    %c0_i32 = arith.constant 0 : i32
    %c0_i32_0 = arith.constant 0 : i32
    %c0_i32_1 = arith.constant 0 : i32
    return %c0_i32, %c0_i32_0, %arg0 : i32, i32, i32
  }
  func.func @transform_3(%arg0: i32) -> (i32, i32) {
    %c0_i32 = arith.constant 0 : i32
    %c0_i32_0 = arith.constant 0 : i32
    return %c0_i32, %arg0 : i32, i32
  }
}

module attributes {stable_mosaic.version = 11 : i64} {
  func.func @_conv_relu_pool_kernel(%arg0: i32, %arg1: memref<16x56xf32, #tpu.memory_space<vmem>>, %arg2: memref<16x1xf32, #tpu.memory_space<vmem>>, %arg3: memref<4x56x128xf32, #tpu.memory_space<vmem>>, %arg4: memref<16x128xf32, #tpu.memory_space<vmem>>) attributes {dimension_semantics = [#tpu.dimension_semantics<parallel>], iteration_bounds = array<i64: 1>, scalar_prefetch = 0 : i64, scratch_operands = 0 : i64, tpu.core_type = #tpu.core_type<tc>, window_params = [{pipeline_mode = #tpu.pipeline_mode<synchronous>, transform_indices = @transform_0, window_bounds = array<i64: 16, 56>}, {pipeline_mode = #tpu.pipeline_mode<synchronous>, transform_indices = @transform_1, window_bounds = array<i64: 16, 1>}, {transform_indices = @transform_2, window_bounds = array<i64: 4, 56, 128>}, {transform_indices = @transform_3, window_bounds = array<i64: 16, 128>}]} {
    %c0 = arith.constant 0 : index
    %c0_0 = arith.constant 0 : index
    %0 = vector.load %arg1[%c0, %c0_0] : memref<16x56xf32, #tpu.memory_space<vmem>>, vector<16x56xf32>
    %c0_1 = arith.constant 0 : index
    %c0_2 = arith.constant 0 : index
    %c0_3 = arith.constant 0 : index
    %1 = vector.load %arg3[%c0_1, %c0_2, %c0_3] : memref<4x56x128xf32, #tpu.memory_space<vmem>>, vector<1x56x128xf32>
    %2 = vector.shape_cast %1 : vector<1x56x128xf32> to vector<56x128xf32>
    %cst = arith.constant dense<0.000000e+00> : vector<16x128xf32>
    %3 = tpu.matmul %0, %2, %cst {dimension_numbers = #tpu.dot_dimension_numbers<[1], [0], [0], [1], [0, 0, 1, 1], [], []>} : vector<16x56xf32>, vector<56x128xf32>, vector<16x128xf32> -> vector<16x128xf32>
    %c1 = arith.constant 1 : index
    %c0_4 = arith.constant 0 : index
    %c0_5 = arith.constant 0 : index
    %4 = vector.load %arg3[%c1, %c0_4, %c0_5] : memref<4x56x128xf32, #tpu.memory_space<vmem>>, vector<1x56x128xf32>
    %5 = vector.shape_cast %4 : vector<1x56x128xf32> to vector<56x128xf32>
    %cst_6 = arith.constant dense<0.000000e+00> : vector<16x128xf32>
    %6 = tpu.matmul %0, %5, %cst_6 {dimension_numbers = #tpu.dot_dimension_numbers<[1], [0], [0], [1], [0, 0, 1, 1], [], []>} : vector<16x56xf32>, vector<56x128xf32>, vector<16x128xf32> -> vector<16x128xf32>
    %7 = arith.maximumf %3, %6 : vector<16x128xf32>
    %c2 = arith.constant 2 : index
    %c0_7 = arith.constant 0 : index
    %c0_8 = arith.constant 0 : index
    %8 = vector.load %arg3[%c2, %c0_7, %c0_8] : memref<4x56x128xf32, #tpu.memory_space<vmem>>, vector<1x56x128xf32>
    %9 = vector.shape_cast %8 : vector<1x56x128xf32> to vector<56x128xf32>
    %cst_9 = arith.constant dense<0.000000e+00> : vector<16x128xf32>
    %10 = tpu.matmul %0, %9, %cst_9 {dimension_numbers = #tpu.dot_dimension_numbers<[1], [0], [0], [1], [0, 0, 1, 1], [], []>} : vector<16x56xf32>, vector<56x128xf32>, vector<16x128xf32> -> vector<16x128xf32>
    %11 = arith.maximumf %7, %10 : vector<16x128xf32>
    %c3 = arith.constant 3 : index
    %c0_10 = arith.constant 0 : index
    %c0_11 = arith.constant 0 : index
    %12 = vector.load %arg3[%c3, %c0_10, %c0_11] : memref<4x56x128xf32, #tpu.memory_space<vmem>>, vector<1x56x128xf32>
    %13 = vector.shape_cast %12 : vector<1x56x128xf32> to vector<56x128xf32>
    %cst_12 = arith.constant dense<0.000000e+00> : vector<16x128xf32>
    %14 = tpu.matmul %0, %13, %cst_12 {dimension_numbers = #tpu.dot_dimension_numbers<[1], [0], [0], [1], [0, 0, 1, 1], [], []>} : vector<16x56xf32>, vector<56x128xf32>, vector<16x128xf32> -> vector<16x128xf32>
    %15 = arith.maximumf %11, %14 : vector<16x128xf32>
    %c0_13 = arith.constant 0 : index
    %c0_14 = arith.constant 0 : index
    %16 = vector.load %arg2[%c0_13, %c0_14] : memref<16x1xf32, #tpu.memory_space<vmem>>, vector<16x1xf32>
    %17 = vector.broadcast %16 : vector<16x1xf32> to vector<16x128xf32>
    %18 = arith.addf %15, %17 : vector<16x128xf32>
    %cst_15 = arith.constant 0.000000e+00 : f32
    %19 = vector.broadcast %cst_15 : f32 to vector<16x128xf32>
    %20 = arith.maximumf %18, %19 : vector<16x128xf32>
    %c0_16 = arith.constant 0 : index
    %c0_17 = arith.constant 0 : index
    %21 = vector.load %arg4[%c0_16, %c0_17] : memref<16x128xf32, #tpu.memory_space<vmem>>, vector<16x128xf32>
    tpu.vector_store %arg4[%c0_16, %c0_17], %20 {strides = array<i32>} : memref<16x128xf32, #tpu.memory_space<vmem>>, vector<16x128xf32>,
    return
  }
  func.func @transform_0(%arg0: i32) -> (i32, i32) {
    %c0_i32 = arith.constant 0 : i32
    %c0_i32_0 = arith.constant 0 : i32
    %c0_i32_1 = arith.constant 0 : i32
    return %c0_i32, %c0_i32_0 : i32, i32
  }
  func.func @transform_1(%arg0: i32) -> (i32, i32) {
    %c0_i32 = arith.constant 0 : i32
    %c0_i32_0 = arith.constant 0 : i32
    %c0_i32_1 = arith.constant 0 : i32
    return %c0_i32, %c0_i32_0 : i32, i32
  }
  func.func @transform_2(%arg0: i32) -> (i32, i32, i32) {
    %c0_i32 = arith.constant 0 : i32
    %c0_i32_0 = arith.constant 0 : i32
    %c0_i32_1 = arith.constant 0 : i32
    return %c0_i32, %c0_i32_0, %arg0 : i32, i32, i32
  }
  func.func @transform_3(%arg0: i32) -> (i32, i32) {
    %c0_i32 = arith.constant 0 : i32
    %c0_i32_0 = arith.constant 0 : i32
    return %c0_i32, %arg0 : i32, i32
  }
}

module attributes {stable_mosaic.version = 11 : i64} {
  func.func @_fc_fused_kernel(%arg0: i32, %arg1: memref<400x128xf32, #tpu.memory_space<vmem>>, %arg2: memref<120x400xf32, #tpu.memory_space<vmem>>, %arg3: memref<120x1xf32, #tpu.memory_space<vmem>>, %arg4: memref<84x120xf32, #tpu.memory_space<vmem>>, %arg5: memref<84x1xf32, #tpu.memory_space<vmem>>, %arg6: memref<10x84xf32, #tpu.memory_space<vmem>>, %arg7: memref<10x1xf32, #tpu.memory_space<vmem>>, %arg8: memref<10x128xf32, #tpu.memory_space<vmem>>) attributes {dimension_semantics = [#tpu.dimension_semantics<parallel>], iteration_bounds = array<i64: 1>, scalar_prefetch = 0 : i64, scratch_operands = 0 : i64, tpu.core_type = #tpu.core_type<tc>, window_params = [{transform_indices = @transform_0, window_bounds = array<i64: 400, 128>}, {pipeline_mode = #tpu.pipeline_mode<synchronous>, transform_indices = @transform_1, window_bounds = array<i64: 120, 400>}, {pipeline_mode = #tpu.pipeline_mode<synchronous>, transform_indices = @transform_2, window_bounds = array<i64: 120, 1>}, {pipeline_mode = #tpu.pipeline_mode<synchronous>, transform_indices = @transform_3, window_bounds = array<i64: 84, 120>}, {pipeline_mode = #tpu.pipeline_mode<synchronous>, transform_indices = @transform_4, window_bounds = array<i64: 84, 1>}, {pipeline_mode = #tpu.pipeline_mode<synchronous>, transform_indices = @transform_5, window_bounds = array<i64: 10, 84>}, {pipeline_mode = #tpu.pipeline_mode<synchronous>, transform_indices = @transform_6, window_bounds = array<i64: 10, 1>}, {transform_indices = @transform_7, window_bounds = array<i64: 10, 128>}]} {
    %c0 = arith.constant 0 : index
    %c0_0 = arith.constant 0 : index
    %0 = vector.load %arg2[%c0, %c0_0] : memref<120x400xf32, #tpu.memory_space<vmem>>, vector<120x400xf32>
    %c0_1 = arith.constant 0 : index
    %c0_2 = arith.constant 0 : index
    %1 = vector.load %arg1[%c0_1, %c0_2] : memref<400x128xf32, #tpu.memory_space<vmem>>, vector<400x128xf32>
    %cst = arith.constant dense<0.000000e+00> : vector<120x128xf32>
    %2 = tpu.matmul %0, %1, %cst {dimension_numbers = #tpu.dot_dimension_numbers<[1], [0], [0], [1], [0, 0, 1, 1], [], []>} : vector<120x400xf32>, vector<400x128xf32>, vector<120x128xf32> -> vector<120x128xf32>
    %c0_3 = arith.constant 0 : index
    %c0_4 = arith.constant 0 : index
    %3 = vector.load %arg3[%c0_3, %c0_4] : memref<120x1xf32, #tpu.memory_space<vmem>>, vector<120x1xf32>
    %4 = vector.broadcast %3 : vector<120x1xf32> to vector<120x128xf32>
    %5 = arith.addf %2, %4 : vector<120x128xf32>
    %cst_5 = arith.constant 0.000000e+00 : f32
    %6 = vector.broadcast %cst_5 : f32 to vector<120x128xf32>
    %7 = arith.maximumf %5, %6 : vector<120x128xf32>
    %c0_6 = arith.constant 0 : index
    %c0_7 = arith.constant 0 : index
    %8 = vector.load %arg4[%c0_6, %c0_7] : memref<84x120xf32, #tpu.memory_space<vmem>>, vector<84x120xf32>
    %cst_8 = arith.constant dense<0.000000e+00> : vector<84x128xf32>
    %9 = tpu.matmul %8, %7, %cst_8 {dimension_numbers = #tpu.dot_dimension_numbers<[1], [0], [0], [1], [0, 0, 1, 1], [], []>} : vector<84x120xf32>, vector<120x128xf32>, vector<84x128xf32> -> vector<84x128xf32>
    %c0_9 = arith.constant 0 : index
    %c0_10 = arith.constant 0 : index
    %10 = vector.load %arg5[%c0_9, %c0_10] : memref<84x1xf32, #tpu.memory_space<vmem>>, vector<84x1xf32>
    %11 = vector.broadcast %10 : vector<84x1xf32> to vector<84x128xf32>
    %12 = arith.addf %9, %11 : vector<84x128xf32>
    %cst_11 = arith.constant 0.000000e+00 : f32
    %13 = vector.broadcast %cst_11 : f32 to vector<84x128xf32>
    %14 = arith.maximumf %12, %13 : vector<84x128xf32>
    %c0_12 = arith.constant 0 : index
    %c0_13 = arith.constant 0 : index
    %15 = vector.load %arg6[%c0_12, %c0_13] : memref<10x84xf32, #tpu.memory_space<vmem>>, vector<10x84xf32>
    %cst_14 = arith.constant dense<0.000000e+00> : vector<10x128xf32>
    %16 = tpu.matmul %15, %14, %cst_14 {dimension_numbers = #tpu.dot_dimension_numbers<[1], [0], [0], [1], [0, 0, 1, 1], [], []>} : vector<10x84xf32>, vector<84x128xf32>, vector<10x128xf32> -> vector<10x128xf32>
    %c0_15 = arith.constant 0 : index
    %c0_16 = arith.constant 0 : index
    %17 = vector.load %arg7[%c0_15, %c0_16] : memref<10x1xf32, #tpu.memory_space<vmem>>, vector<10x1xf32>
    %18 = vector.broadcast %17 : vector<10x1xf32> to vector<10x128xf32>
    %19 = arith.addf %16, %18 : vector<10x128xf32>
    %c0_17 = arith.constant 0 : index
    %c0_18 = arith.constant 0 : index
    %20 = vector.load %arg8[%c0_17, %c0_18] : memref<10x128xf32, #tpu.memory_space<vmem>>, vector<10x128xf32>
    tpu.vector_store %arg8[%c0_17, %c0_18], %19 {strides = array<i32>} : memref<10x128xf32, #tpu.memory_space<vmem>>, vector<10x128xf32>,
    return
  }
  func.func @transform_0(%arg0: i32) -> (i32, i32) {
    %c0_i32 = arith.constant 0 : i32
    %c0_i32_0 = arith.constant 0 : i32
    return %c0_i32, %arg0 : i32, i32
  }
  func.func @transform_1(%arg0: i32) -> (i32, i32) {
    %c0_i32 = arith.constant 0 : i32
    %c0_i32_0 = arith.constant 0 : i32
    %c0_i32_1 = arith.constant 0 : i32
    return %c0_i32, %c0_i32_0 : i32, i32
  }
  func.func @transform_2(%arg0: i32) -> (i32, i32) {
    %c0_i32 = arith.constant 0 : i32
    %c0_i32_0 = arith.constant 0 : i32
    %c0_i32_1 = arith.constant 0 : i32
    return %c0_i32, %c0_i32_0 : i32, i32
  }
  func.func @transform_3(%arg0: i32) -> (i32, i32) {
    %c0_i32 = arith.constant 0 : i32
    %c0_i32_0 = arith.constant 0 : i32
    %c0_i32_1 = arith.constant 0 : i32
    return %c0_i32, %c0_i32_0 : i32, i32
  }
  func.func @transform_4(%arg0: i32) -> (i32, i32) {
    %c0_i32 = arith.constant 0 : i32
    %c0_i32_0 = arith.constant 0 : i32
    %c0_i32_1 = arith.constant 0 : i32
    return %c0_i32, %c0_i32_0 : i32, i32
  }
  func.func @transform_5(%arg0: i32) -> (i32, i32) {
    %c0_i32 = arith.constant 0 : i32
    %c0_i32_0 = arith.constant 0 : i32
    %c0_i32_1 = arith.constant 0 : i32
    return %c0_i32, %c0_i32_0 : i32, i32
  }
  func.func @transform_6(%arg0: i32) -> (i32, i32) {
    %c0_i32 = arith.constant 0 : i32
    %c0_i32_0 = arith.constant 0 : i32
    %c0_i32_1 = arith.constant 0 : i32
    return %c0_i32, %c0_i32_0 : i32, i32
  }
  func.func @transform_7(%arg0: i32) -> (i32, i32) {
    %c0_i32 = arith.constant 0 : i32
    %c0_i32_0 = arith.constant 0 : i32
    return %c0_i32, %arg0 : i32, i32
  }
}

</mosaic_0001>

<bundles_post_ra>
// kernel: lenet_forward.3
= control target key start
LH: loop header
LB: loop body
LE: loop exit
PB: predicated region body
PF: predicated region fallthrough
CT: control target
= control target key end

     0   :  { %v737_v0 = vmov 0.0|0.0   ;;  %vm738_vm0 = vmmov 0   ;;  %v739_v4 = vmov 0.0   ;;  %v740_v9 = vmov 0   ;;  %s872_s2 = inlined_call_operand.vmem [shape: f32[4,16,384], index: 2, kind: input, shape index: {}]   ;;  %s873_s0 = inlined_call_operand.vmem [shape: f32[8,16], index: 0, kind: input, shape index: {}]   ;;  %s874_s1 = inlined_call_operand.vmem [shape: f32[8,1], index: 1, kind: input, shape index: {}]   ;;  %s875_s3 = inlined_call_operand.vmem [shape: f32[8,384], index: 3, kind: output, shape index: {}]  }
   0x1   :  { %708 = vmatprep.subr.bf16.mxu1 %v737_v0  ;;  %v16_v1 = vld [vmem:[%s872_s2 + $0x8] sm:$0xff]  ;;  %v19_v2 = vld [vmem:[%s872_s2 + $0x20] sm:$0xff]  ;;  %v17_v3 = vld [vmem:[%s872_s2 + $0x10] sm:$0xff]  ;;  %680 = vmatprep.mubr.msk.f32.mxu1 %vm738_vm0, %v739_v4  ;;  %vm21_vm1 = vcmask 130048  }
   0x2   :  { %v704_v5 = vpack.c.bf16 %v19_v2, %v16_v1  ;;  %v20_v6 = vld [vmem:[%s872_s2 + $0x28] sm:$0xff]  ;;  %v15_v7 = vld [vmem:[%s872_s2] sm:$0xff]  ;;  %v18_v8 = vld [vmem:[%s872_s2 + $0x18] sm:$0xff]  ;;  %89 = vmatprep.mubr.f32.mxu0 %v739_v4  ;;  %736 = vset.pattern.permute.xlu0 %v740_v9 }
   0x3   :  { %v709_v10 = vpack.c.bf16 %v20_v6, %v17_v3  ;;  %v706_v11 = vpack.c.bf16 %v18_v8, %v15_v7  ;;  %v14_v12 = vld [vmem:[%s873_s0] sm:$0xff]  ;;  %v641_v13 = vld [vmem:[%s872_s2 + $0x38] sm:$0xff]  ;;  %v644_v14 = vld [vmem:[%s872_s2 + $0x50] sm:$0xff] }
   0x4   :  { %705 = vmatprep.subr.bf16.mxu0 %v704_v5  ;;  %v711_v15 = vpack.c.bf16 %v644_v14, %v641_v13  ;;  %v642_v16 = vld [vmem:[%s872_s2 + $0x40] sm:$0xff]  ;;  %v645_v17 = vld [vmem:[%s872_s2 + $0x58] sm:$0xff]  ;;  %v640_v18 = vld [vmem:[%s872_s2 + $0x30] sm:$0xff] }
   0x5   :  { %710 = vmatpush3.bf16.msra.mxu1 %v709_v10  ;;  %707 = vmatpush1.bf16.msra.mxu0 %v706_v11  ;;  %v716_v19 = vpack.c.bf16 %v645_v17, %v642_v16  ;;  %v643_v20 = vld [vmem:[%s872_s2 + $0x48] sm:$0xff]  ;;  %v652_v22 = vld [vmem:[%s872_s2 + $0x80] sm:$0xff]  ;;  %v650_v24 = vld [vmem:[%s872_s2 + $0x70] sm:$0xff] }
   0x6   :  { %v649_v21 = vld [vmem:[%s872_s2 + $0x68] sm:$0xff]  ;;  %715 = vmatprep.subr.bf16.mxu1 %v737_v0  ;;  %712 = vmatprep.subr.bf16.mxu0 %v711_v15  ;;  %v713_v23 = vpack.c.bf16 %v643_v20, %v640_v18  ;;  %v648_v26 = vld [vmem:[%s872_s2 + $0x60] sm:$0xff]  ;;  %v651_v28 = vld [vmem:[%s872_s2 + $0x78] sm:$0xff] }
   0x7   :  { %v653_v25 = vld [vmem:[%s872_s2 + $0x88] sm:$0xff]  ;;  %v718_v27 = vpack.c.bf16 %v652_v22, %v649_v21  ;;  %v657_v29 = vld [vmem:[%s872_s2 + $0x98] sm:$0xff]  ;;  %v660_v30 = vld [vmem:[%s872_s2 + $0xb0] sm:$0xff]  ;;  %v720_v32 = vpack.c.bf16 %v651_v28, %v648_v26 }
   0x8   :  { %681 = vmatmul.mubr.msk.f32.vlgmr.msra.gmra.mrb[0].mxu1 %vm21_vm1, %v14_v12  ;;  %638 = vmatmul.mubr.msk.f32.vlgmr.msra.gmra.mrb[0].mxu0 %vm21_vm1, %v14_v12  ;;  %v723_v31 = vpack.c.bf16 %v653_v25, %v650_v24  ;;  %v658_v33 = vld [vmem:[%s872_s2 + $0xa0] sm:$0xff]  ;;  %v661_v34 = vld [vmem:[%s872_s2 + $0xb8] sm:$0xff]  ;;  %v656_v35 = vld [vmem:[%s872_s2 + $0x90] sm:$0xff]  ;;  %v725_v37 = vpack.c.bf16 %v660_v30, %v657_v29 }
   0x9   :  { %717 = vmatpush3.bf16.msra.mxu1 %v716_v19  ;;  %714 = vmatpush1.bf16.msra.mxu0 %v713_v23  ;;  %v659_v36 = vld [vmem:[%s872_s2 + $0xa8] sm:$0xff]  ;;  %v730_v38 = vpack.c.bf16 %v661_v34, %v658_v33  ;;  %v619_v40 = vld [vmem:[%s874_s1] sm:$0xff] }
   0xa   :  { %687 = vmatprep.mubr.msk.f32.mxu1 %vm738_vm0, %v739_v4  ;;  %237 = vmatprep.mubr.f32.mxu0 %v739_v4  ;;  %v727_v39 = vpack.c.bf16 %v659_v36, %v656_v35 }
   0xb   :  { %722 = vmatprep.subr.bf16.mxu1 %v737_v0  ;;  %719 = vmatprep.subr.bf16.mxu0 %v718_v27 }
   0xc   :  { %688 = vmatmul.mubr.msk.f32.vlgmr.msra.gmra.mrb[2].mxu1 %vm21_vm1, %v14_v12  ;;  %646 = vmatmul.mubr.msk.f32.vlgmr.msra.gmra.mrb[2].mxu0 %vm21_vm1, %v14_v12 }
   0xd   :  { %724 = vmatpush3.bf16.msra.mxu1 %v723_v31  ;;  %721 = vmatpush1.bf16.msra.mxu0 %v720_v32 }
   0xe   :  { %694 = vmatprep.mubr.msk.f32.mxu1 %vm738_vm0, %v739_v4  ;;  %388 = vmatprep.mubr.f32.mxu0 %v739_v4 }
   0xf   :  { %729 = vmatprep.subr.bf16.mxu1 %v737_v0  ;;  %726 = vmatprep.subr.bf16.mxu0 %v725_v37 }
  0x10   :  { %695 = vmatmul.mubr.msk.f32.vlgmr.msra.gmra.mrb[4].mxu1 %vm21_vm1, %v14_v12  ;;  %654 = vmatmul.mubr.msk.f32.vlgmr.msra.gmra.mrb[4].mxu0 %vm21_vm1, %v14_v12 }
  0x11   :  { %731 = vmatpush3.bf16.msra.mxu1 %v730_v38  ;;  %728 = vmatpush1.bf16.msra.mxu0 %v727_v39 }
  0x12   :  { %701 = vmatprep.mubr.msk.f32.mxu1 %vm738_vm0, %v739_v4  ;;  %539 = vmatprep.mubr.f32.mxu0 %v739_v4 }
  0x13   :  { %622 = vperm.xlu0 %736, %v619_v40  }
  0x14   :  { %702 = vmatmul.mubr.msk.f32.vlgmr.msra.gmra.mrb[6].mxu1 %vm21_vm1, %v14_v12  ;;  %662 = vmatmul.mubr.msk.f32.vlgmr.msra.gmra.mrb[6].mxu0 %vm21_vm1, %v14_v12 }
  0x92   :  { %v623_v59 = vpop.permute.xlu0 %622 }
  0xdb   :  { %v91_v41 = vpop.f32.mrb[0].mxu0  ;;  %v162_v42 = vpop.f32.mrb[0].mxu1 }
  0xdc   :  { %v93_v43 = vpop.f32.mrb[1].mxu0  ;;  %v682_v44 = vpop.f32.mrb[1].mxu1 }
  0xdf   :  { %v310_v45 = vpop.f32.mrb[2].mxu1  ;;  %v239_v46 = vpop.f32.mrb[2].mxu0 }
  0xe0   :  { %v316_v47 = vmax.f32 %v162_v42, %v310_v45  ;;  %v314_v48 = vmax.f32 %v91_v41, %v239_v46  ;;  %v241_v49 = vpop.f32.mrb[3].mxu0  ;;  %v689_v50 = vpop.f32.mrb[3].mxu1 }
  0xe1   :  { %v315_v51 = vmax.f32 %v93_v43, %v241_v49 }
  0xe3   :  { %v461_v52 = vpop.f32.mrb[4].mxu1  ;;  %v390_v53 = vpop.f32.mrb[4].mxu0 }
  0xe4   :  { %v467_v54 = vmax.f32 %v316_v47, %v461_v52  ;;  %v465_v55 = vmax.f32 %v314_v48, %v390_v53  ;;  %v392_v56 = vpop.f32.mrb[5].mxu0  ;;  %v696_v57 = vpop.f32.mrb[5].mxu1 }
  0xe5   :  { %v466_v58 = vmax.f32 %v315_v51, %v392_v56 }
  0xe7   :  { %v612_v60 = vpop.f32.mrb[6].mxu1  ;;  %v541_v61 = vpop.f32.mrb[6].mxu0 }
  0xe8   :  { %v618_v62 = vmax.f32 %v467_v54, %v612_v60  ;;  %v616_v63 = vmax.f32 %v465_v55, %v541_v61  ;;  %v543_v0 = vpop.f32.mrb[7].mxu0  ;;  %v703_v1 = vpop.f32.mrb[7].mxu1 }
  0xe9   :  { %v617_v2 = vmax.f32 %v466_v58, %v543_v0 }
  0xea   :  { %v625_v3 = vadd.f32 %v623_v59, %v616_v63  ;;  %v627_v4 = vadd.f32 %v623_v59, %v618_v62 }
  0xeb   :  { %v626_v5 = vadd.f32 %v623_v59, %v617_v2 }
  0xec   :  { %v628_v6 = vmax.f32 %v625_v3, 0.0  ;;  %v630_v7 = vmax.f32 %v627_v4, 0.0 }
  0xed   :  { %v629_v8 = vmax.f32 %v626_v5, 0.0 }
  0xee   :  { %631 = vst [vmem:[%s875_s3] sm:$0xff] %v628_v6  ;;  %633 = vst [vmem:[%s875_s3 + $0x10] sm:$0xff] %v630_v7 }
  0xef   :  { %632 = vst [vmem:[%s875_s3 + $0x8] sm:$0xff] %v629_v8 }

// kernel: lenet_forward.4
= control target key start
LH: loop header
LB: loop body
LE: loop exit
PB: predicated region body
PF: predicated region fallthrough
CT: control target
= control target key end

     0   :  { %v565_v3 = vmov 0   ;;  %vm23_vm0 = vcmask 457728   ;;  %s696_s2 = inlined_call_operand.vmem [shape: f32[4,56,128], index: 2, kind: input, shape index: {}]   ;;  %s697_s0 = inlined_call_operand.vmem [shape: f32[16,56], index: 0, kind: input, shape index: {}]   ;;  %s698_s1 = inlined_call_operand.vmem [shape: f32[16,1], index: 1, kind: input, shape index: {}]   ;;  %s699_s3 = inlined_call_operand.vmem [shape: f32[16,128], index: 3, kind: output, shape index: {}]  }
   0x1   :  { %v16_v0 = vld [vmem:[%s696_s2] sm:$0xff]  ;;  %v17_v1 = vld [vmem:[%s696_s2 + $0x8] sm:$0xff]  ;;  %v384_v2 = vld [vmem:[%s696_s2 + $0x38] sm:$0xff]  ;;  %564 = vset.pattern.permute.xlu0 %v565_v3 }
   0x2   :  { %v515_v4 = vpack.c.bf16 %v17_v1, %v16_v0  ;;  %v385_v5 = vld [vmem:[%s696_s2 + $0x40] sm:$0xff]  ;;  %v18_v6 = vld [vmem:[%s696_s2 + $0x10] sm:$0xff]  ;;  %v19_v7 = vld [vmem:[%s696_s2 + $0x18] sm:$0xff] }
   0x3   :  { %v527_v8 = vpack.c.bf16 %v385_v5, %v384_v2  ;;  %v519_v9 = vpack.c.bf16 %v19_v7, %v18_v6  ;;  %v386_v10 = vld [vmem:[%s696_s2 + $0x48] sm:$0xff]  ;;  %v387_v11 = vld [vmem:[%s696_s2 + $0x50] sm:$0xff]  ;;  %v20_v12 = vld [vmem:[%s696_s2 + $0x20] sm:$0xff] }
   0x4   :  { %516 = vmatprep.subr.bf16.mxu0 %v515_v4  ;;  %v531_v13 = vpack.c.bf16 %v387_v11, %v386_v10  ;;  %v21_v14 = vld [vmem:[%s696_s2 + $0x28] sm:$0xff]  ;;  %v388_v15 = vld [vmem:[%s696_s2 + $0x58] sm:$0xff]  ;;  %v389_v16 = vld [vmem:[%s696_s2 + $0x60] sm:$0xff] }
   0x5   :  { %528 = vmatprep.subr.bf16.mxu1 %v527_v8  ;;  %518 = vmatpush3.bf16.msra.mxu0 %v515_v4  ;;  %v14_v17 = vld [vmem:[%s697_s0] sm:$0xff]  ;;  %v523_v18 = vpack.c.bf16 %v21_v14, %v20_v12  ;;  %v535_v19 = vpack.c.bf16 %v389_v16, %v388_v15  ;;  %v22_v20 = vld [vmem:[%s696_s2 + $0x30] sm:$0xff]  ;;  %v390_v22 = vld [vmem:[%s696_s2 + $0x68] sm:$0xff] }
   0x6   :  { %530 = vmatpush3.bf16.msra.mxu1 %v527_v8  ;;  %520 = vmatprep.subr.bf16.mxu0 %v519_v9  ;;  %v360_v21 = vld [vmem:[%s698_s1] sm:$0xff]  ;;  %v393_v23 = vld [vmem:[%s696_s2 + $0x70] sm:$0xff]  ;;  %v394_v24 = vld [vmem:[%s696_s2 + $0x78] sm:$0xff] }
   0x7   :  { %532 = vmatprep.subr.bf16.mxu1 %v531_v13  ;;  %461 = vmatprep.mubr.msk.f32.mxu0 %vm23_vm0, %v14_v17  ;;  %v402_v25 = vld [vmem:[%s696_s2 + $0xa8] sm:$0xff]  ;;  %v403_v26 = vld [vmem:[%s696_s2 + $0xb0] sm:$0xff]  ;;  %v395_v28 = vld [vmem:[%s696_s2 + $0x80] sm:$0xff]  ;;  %v539_v31 = vpack.c.bf16 %v394_v24, %v393_v23 }
   0x8   :  { %478 = vmatprep.mubr.msk.f32.mxu1 %vm23_vm0, %v14_v17  ;;  %364 = vperm.xlu0 %564, %v360_v21   ;;  %v361_v27 = vld [vmem:[%s698_s1 + $0x8] sm:$0xff]  ;;  %v404_v32 = vld [vmem:[%s696_s2 + $0xb8] sm:$0xff]  ;;  %v405_v33 = vld [vmem:[%s696_s2 + $0xc0] sm:$0xff]  ;;  %v551_v34 = vpack.c.bf16 %v403_v26, %v402_v25 }
   0x9   :  { %522 = vmatpush3.bf16.msra.mxu0 %v519_v9  ;;  %v396_v29 = vld [vmem:[%s696_s2 + $0x88] sm:$0xff]  ;;  %v555_v36 = vpack.c.bf16 %v405_v33, %v404_v32  ;;  %v397_v37 = vld [vmem:[%s696_s2 + $0x90] sm:$0xff]  ;;  %v398_v38 = vld [vmem:[%s696_s2 + $0x98] sm:$0xff] }
   0xa   :  { %534 = vmatpush3.bf16.msra.mxu1 %v531_v13  ;;  %524 = vmatprep.subr.bf16.mxu0 %v523_v18  ;;  %v15_v30 = vld [vmem:[%s697_s0 + $0x8] sm:$0xff]  ;;  %v543_v35 = vpack.c.bf16 %v396_v29, %v395_v28  ;;  %v407_v40 = vld [vmem:[%s696_s2 + $0xd0] sm:$0xff]  ;;  %v547_v41 = vpack.c.bf16 %v398_v38, %v397_v37  ;;  %v399_v43 = vld [vmem:[%s696_s2 + $0xa0] sm:$0xff] }
   0xb   :  { %536 = vmatprep.subr.bf16.mxu1 %v535_v19  ;;  %v406_v39 = vld [vmem:[%s696_s2 + $0xc8] sm:$0xff]  ;;  %v408_v44 = vld [vmem:[%s696_s2 + $0xd8] sm:$0xff] }
   0xc   :  { %369 = vperm.xlu0 %564, %v361_v27   ;;  %v559_v42 = vpack.c.bf16 %v407_v40, %v406_v39 }
   0xd   :  { %526 = vmatpush3.bf16.msra.mxu0 %v523_v18 }
   0xe   :  { %538 = vmatpush3.bf16.msra.mxu1 %v535_v19  ;;  %459 = vmatprep.subr.mxu0 %v22_v20 }
   0xf   :  { %476 = vmatprep.subr.mxu1 %v390_v22 }
  0x11   :  { %460 = vmatpush3.msra.mxu0 %v22_v20 }
  0x12   :  { %477 = vmatpush3.msra.mxu1 %v390_v22  ;;  %462 = vmatmul.mubr.msk.f32.vlgmr.msra.gmra.mrb[0].mxu0 %vm23_vm0, %v15_v30 }
  0x13   :  { %479 = vmatmul.mubr.msk.f32.vlgmr.msra.gmra.mrb[0].mxu1 %vm23_vm0, %v15_v30  ;;  %540 = vmatprep.subr.bf16.mxu0 %v539_v31 }
  0x14   :  { %542 = vmatpush3.bf16.msra.mxu0 %v539_v31  ;;  %552 = vmatprep.subr.bf16.mxu1 %v551_v34 }
  0x15   :  { %554 = vmatpush3.bf16.msra.mxu1 %v551_v34  ;;  %544 = vmatprep.subr.bf16.mxu0 %v543_v35 }
  0x16   :  { %556 = vmatprep.subr.bf16.mxu1 %v555_v36  ;;  %495 = vmatprep.mubr.msk.f32.mxu0 %vm23_vm0, %v14_v17 }
  0x17   :  { %512 = vmatprep.mubr.msk.f32.mxu1 %vm23_vm0, %v14_v17 }
  0x18   :  { %546 = vmatpush3.bf16.msra.mxu0 %v543_v35 }
  0x19   :  { %558 = vmatpush3.bf16.msra.mxu1 %v555_v36  ;;  %548 = vmatprep.subr.bf16.mxu0 %v547_v41 }
  0x1a   :  { %560 = vmatprep.subr.bf16.mxu1 %v559_v42 }
  0x1c   :  { %550 = vmatpush3.bf16.msra.mxu0 %v547_v41 }
  0x1d   :  { %562 = vmatpush3.bf16.msra.mxu1 %v559_v42  ;;  %493 = vmatprep.subr.mxu0 %v399_v43 }
  0x1e   :  { %510 = vmatprep.subr.mxu1 %v408_v44 }
  0x20   :  { %494 = vmatpush3.msra.mxu0 %v399_v43 }
  0x21   :  { %496 = vmatmul.mubr.msk.f32.vlgmr.msra.gmra.mrb[2].mxu0 %vm23_vm0, %v15_v30  ;;  %511 = vmatpush3.msra.mxu1 %v408_v44 }
  0x22   :  { %513 = vmatmul.mubr.msk.f32.vlgmr.msra.gmra.mrb[2].mxu1 %vm23_vm0, %v15_v30 }
  0x87   :  { %v365_v51 = vpop.permute.xlu0 %364 }
  0x8b   :  { %v370_v59 = vpop.permute.xlu0 %369 }
  0xe5   :  { %v463_v45 = vpop.f32.mrb[0].mxu0 }
  0xe6   :  { %v480_v46 = vpop.f32.mrb[0].mxu1  ;;  %v96_v47 = vpop.f32.mrb[1].mxu0 }
  0xe7   :  { %v189_v48 = vmax.f32 %v463_v45, %v480_v46  ;;  %v179_v49 = vpop.f32.mrb[1].mxu1 }
  0xe8   :  { %v188_v50 = vmax.f32 %v96_v47, %v179_v49 }
  0xf4   :  { %v497_v52 = vpop.f32.mrb[2].mxu0 }
  0xf5   :  { %v274_v53 = vmax.f32 %v189_v48, %v497_v52  ;;  %v264_v54 = vpop.f32.mrb[3].mxu0  ;;  %v514_v55 = vpop.f32.mrb[2].mxu1 }
  0xf6   :  { %v273_v56 = vmax.f32 %v188_v50, %v264_v54  ;;  %v349_v57 = vpop.f32.mrb[3].mxu1 }
  0xf7   :  { %v359_v58 = vmax.f32 %v274_v53, %v514_v55 }
  0xf8   :  { %v358_v60 = vmax.f32 %v273_v56, %v349_v57 }
  0xf9   :  { %v373_v61 = vadd.f32 %v370_v59, %v359_v58 }
  0xfa   :  { %v372_v62 = vadd.f32 %v365_v51, %v358_v60 }
  0xfb   :  { %v375_v63 = vmax.f32 %v373_v61, 0.0 }
  0xfc   :  { %v374_v0 = vmax.f32 %v372_v62, 0.0 }
  0xfd   :  { %377 = vst [vmem:[%s699_s3 + $0x8] sm:$0xff] %v375_v63 }
  0xfe   :  { %376 = vst [vmem:[%s699_s3] sm:$0xff] %v374_v0 }

// kernel: lenet_forward.5
= control target key start
LH: loop header
LB: loop body
LE: loop exit
PB: predicated region body
PF: predicated region fallthrough
CT: control target
= control target key end

     0   :  { %v1270_v3 = vmov 0   ;;  %v1271_v57 = vmov 0.0|0.0   ;;  %vm226_vm0 = vcmask 130048   ;;  %vm1272_vm1 = vmmov 0   ;;  %s1861_s0 = inlined_call_operand.vmem [shape: f32[400,128], index: 0, kind: input, shape index: {}]   ;;  %s1862_s1 = inlined_call_operand.vmem [shape: f32[120,400], index: 1, kind: input, shape index: {}]   ;;  %s1863_s2 = inlined_call_operand.vmem [shape: f32[120,1], index: 2, kind: input, shape index: {}]   ;;  %s1864_s4 = inlined_call_operand.vmem [shape: f32[84,1], index: 4, kind: input, shape index: {}]   ;;  %s1865_s6 = inlined_call_operand.vmem [shape: f32[10,1], index: 6, kind: input, shape index: {}]   ;;  %s1866_s3 = inlined_call_operand.vmem [shape: f32[84,120], index: 3, kind: input, shape index: {}]   ;;  %s1867_s5 = inlined_call_operand.vmem [shape: f32[10,84], index: 5, kind: input, shape index: {}]   ;;  %s1868_s7 = inlined_call_operand.vmem [shape: f32[10,128], index: 7, kind: output, shape index: {}]  }
   0x1   :  { %v102_v0 = vld [vmem:[%s1861_s0 + $0x80] sm:$0xff]  ;;  %v103_v1 = vld [vmem:[%s1861_s0 + $0x88] sm:$0xff]  ;;  %1268 = vset.pattern.permute.xlu0 %v1270_v3  ;;  %1269 = vset.pattern.permute.xlu1 %v1270_v3  ;;  %v104_v6 = vld [vmem:[%s1861_s0 + $0x90] sm:$0xff]  ;;  %vm644_vm2 = vcmask 982016   ;;  %vm823_vm3 = vcmask 687104   ;;  %vm830_vm4 = vcmask 1043456  }
   0x2   :  { %v86_v2 = vld [vmem:[%s1861_s0] sm:$0xff]  ;;  %v1148_v4 = vpack.c.bf16 %v103_v1, %v102_v0  ;;  %v87_v5 = vld [vmem:[%s1861_s0 + $0x8] sm:$0xff]  ;;  %v105_v7 = vld [vmem:[%s1861_s0 + $0x98] sm:$0xff] }
   0x3   :  { %v1150_v8 = vpack.c.bf16 %v87_v5, %v86_v2  ;;  %v1152_v9 = vpack.c.bf16 %v105_v7, %v104_v6  ;;  %v88_v10 = vld [vmem:[%s1861_s0 + $0x10] sm:$0xff]  ;;  %v89_v11 = vld [vmem:[%s1861_s0 + $0x18] sm:$0xff]  ;;  %v106_v12 = vld [vmem:[%s1861_s0 + $0xa0] sm:$0xff] }
   0x4   :  { %1248 = vmatprep.subr.bf16.mxu1 %v1148_v4  ;;  %v107_v13 = vld [vmem:[%s1861_s0 + $0xa8] sm:$0xff]  ;;  %1149 = vmatprep.subr.bf16.mxu0 %v1148_v4  ;;  %v1154_v14 = vpack.c.bf16 %v89_v11, %v88_v10  ;;  %v90_v16 = vld [vmem:[%s1861_s0 + $0x20] sm:$0xff]  ;;  %v108_v18 = vld [vmem:[%s1861_s0 + $0xb0] sm:$0xff] }
   0x5   :  { %1256 = vmatpush3.bf16.msra.mxu1 %v1150_v8  ;;  %1151 = vmatpush3.bf16.msra.mxu0 %v1150_v8  ;;  %v1156_v15 = vpack.c.bf16 %v107_v13, %v106_v12  ;;  %v91_v17 = vld [vmem:[%s1861_s0 + $0x28] sm:$0xff]  ;;  %v109_v19 = vld [vmem:[%s1861_s0 + $0xb8] sm:$0xff]  ;;  %v92_v22 = vld [vmem:[%s1861_s0 + $0x30] sm:$0xff] }
   0x6   :  { %1249 = vmatprep.subr.bf16.mxu1 %v1152_v9  ;;  %1153 = vmatprep.subr.bf16.mxu0 %v1152_v9  ;;  %v1158_v20 = vpack.c.bf16 %v91_v17, %v90_v16  ;;  %v1160_v21 = vpack.c.bf16 %v109_v19, %v108_v18  ;;  %v93_v23 = vld [vmem:[%s1861_s0 + $0x38] sm:$0xff]  ;;  %v110_v24 = vld [vmem:[%s1861_s0 + $0xc0] sm:$0xff]  ;;  %v111_v25 = vld [vmem:[%s1861_s0 + $0xc8] sm:$0xff] }
   0x7   :  { %v59_v26 = vld [vmem:[%s1862_s1 + $0x108] sm:$0xff]  ;;  %v1162_v27 = vpack.c.bf16 %v93_v23, %v92_v22  ;;  %v1164_v28 = vpack.c.bf16 %v111_v25, %v110_v24  ;;  %v94_v29 = vld [vmem:[%s1861_s0 + $0x40] sm:$0xff]  ;;  %v112_v31 = vld [vmem:[%s1861_s0 + $0xd0] sm:$0xff] }
   0x8   :  { %376 = vmatprep.mubr.f32.mxu1 %v59_v26  ;;  %v95_v30 = vld [vmem:[%s1861_s0 + $0x48] sm:$0xff]  ;;  %v113_v32 = vld [vmem:[%s1861_s0 + $0xd8] sm:$0xff]  ;;  %v96_v35 = vld [vmem:[%s1861_s0 + $0x50] sm:$0xff] }
   0x9   :  { %1257 = vmatpush3.bf16.msra.mxu1 %v1154_v14  ;;  %1155 = vmatpush3.bf16.msra.mxu0 %v1154_v14  ;;  %v1166_v33 = vpack.c.bf16 %v95_v30, %v94_v29  ;;  %v1168_v34 = vpack.c.bf16 %v113_v32, %v112_v31  ;;  %v97_v36 = vld [vmem:[%s1861_s0 + $0x58] sm:$0xff]  ;;  %v114_v37 = vld [vmem:[%s1861_s0 + $0xe0] sm:$0xff]  ;;  %v115_v38 = vld [vmem:[%s1861_s0 + $0xe8] sm:$0xff] }
   0xa   :  { %1250 = vmatprep.subr.bf16.mxu1 %v1156_v15  ;;  %1157 = vmatprep.subr.bf16.mxu0 %v1156_v15  ;;  %v1170_v39 = vpack.c.bf16 %v97_v36, %v96_v35  ;;  %v27_v40 = vld [vmem:[%s1862_s1 + $0x8] sm:$0xff]  ;;  %v1172_v41 = vpack.c.bf16 %v115_v38, %v114_v37  ;;  %v98_v42 = vld [vmem:[%s1861_s0 + $0x60] sm:$0xff]  ;;  %v116_v44 = vld [vmem:[%s1861_s0 + $0xf0] sm:$0xff] }
   0xb   :  { %v99_v43 = vld [vmem:[%s1861_s0 + $0x68] sm:$0xff]  ;;  %v117_v45 = vld [vmem:[%s1861_s0 + $0xf8] sm:$0xff]  ;;  %336 = vmatprep.mubr.f32.mxu0 %v27_v40  ;;  %v100_v48 = vld [vmem:[%s1861_s0 + $0x70] sm:$0xff] }
   0xc   :  { %v1174_v46 = vpack.c.bf16 %v99_v43, %v98_v42  ;;  %v1176_v47 = vpack.c.bf16 %v117_v45, %v116_v44  ;;  %v101_v49 = vld [vmem:[%s1861_s0 + $0x78] sm:$0xff]  ;;  %v118_v51 = vld [vmem:[%s1861_s0 + $0x100] sm:$0xff]  ;;  %v119_v52 = vld [vmem:[%s1861_s0 + $0x108] sm:$0xff] }
   0xd   :  { %1258 = vmatpush3.bf16.msra.mxu1 %v1158_v20  ;;  %1159 = vmatpush3.bf16.msra.mxu0 %v1158_v20  ;;  %v1178_v50 = vpack.c.bf16 %v101_v49, %v100_v48  ;;  %v58_v53 = vld [vmem:[%s1862_s1 + $0x100] sm:$0xff]  ;;  %v1181_v54 = vpack.c.bf16 %v119_v52, %v118_v51  ;;  %v120_v58 = vld [vmem:[%s1861_s0 + $0x110] sm:$0xff]  ;;  %v121_v59 = vld [vmem:[%s1861_s0 + $0x118] sm:$0xff] }
   0xe   :  { %1251 = vmatprep.subr.bf16.mxu1 %v1160_v21  ;;  %1161 = vmatprep.subr.bf16.mxu0 %v1160_v21  ;;  %v26_v55 = vld [vmem:[%s1862_s1] sm:$0xff]  ;;  %v63_v60 = vld [vmem:[%s1862_s1 + $0x128] sm:$0xff]  ;;  %v138_v63 = vld [vmem:[%s1863_s2 + $0x10] sm:$0xff]  ;;  %v1184_v0 = vpack.c.bf16 %v121_v59, %v120_v58 }
   0xf   :  { %v136_v56 = vld [vmem:[%s1863_s2] sm:$0xff]  ;;  %v31_v61 = vld [vmem:[%s1862_s1 + $0x28] sm:$0xff]  ;;  %163 = vperm.xlu1 %1269, %v138_v63   ;;  %v139_v8 = vld [vmem:[%s1863_s2 + $0x18] sm:$0xff] }
  0x10   :  { %153 = vperm.xlu0 %1268, %v136_v56   ;;  %v137_v62 = vld [vmem:[%s1863_s2 + $0x8] sm:$0xff]  ;;  %v62_v1 = vld [vmem:[%s1862_s1 + $0x120] sm:$0xff]  ;;  %v124_v12 = vld [vmem:[%s1861_s0 + $0x130] sm:$0xff] }
  0x11   :  { %1259 = vmatpush3.bf16.msra.mxu1 %v1162_v27  ;;  %1163 = vmatpush3.bf16.msra.mxu0 %v1162_v27  ;;  %v30_v2 = vld [vmem:[%s1862_s1 + $0x20] sm:$0xff]  ;;  %v123_v4 = vld [vmem:[%s1861_s0 + $0x128] sm:$0xff]  ;;  %v125_v13 = vld [vmem:[%s1861_s0 + $0x138] sm:$0xff] }
  0x12   :  { %1252 = vmatprep.subr.bf16.mxu1 %v1164_v28  ;;  %1165 = vmatprep.subr.bf16.mxu0 %v1164_v28  ;;  %v122_v3 = vld [vmem:[%s1861_s0 + $0x120] sm:$0xff]  ;;  %v67_v5 = vld [vmem:[%s1862_s1 + $0x148] sm:$0xff]  ;;  %v142_v16 = vld [vmem:[%s1863_s2 + $0x30] sm:$0xff]  ;;  %v1190_v18 = vpack.c.bf16 %v125_v13, %v124_v12 }
  0x13   :  { %v35_v6 = vld [vmem:[%s1862_s1 + $0x48] sm:$0xff]  ;;  %v140_v7 = vld [vmem:[%s1863_s2 + $0x20] sm:$0xff]  ;;  %v1187_v9 = vpack.c.bf16 %v123_v4, %v122_v3  ;;  %168 = vperm.xlu1 %1269, %v139_v8   ;;  %v143_v26 = vld [vmem:[%s1863_s2 + $0x38] sm:$0xff] }
  0x14   :  { %158 = vperm.xlu0 %1268, %v137_v62   ;;  %v66_v10 = vld [vmem:[%s1862_s1 + $0x140] sm:$0xff]  ;;  %v71_v14 = vld [vmem:[%s1862_s1 + $0x168] sm:$0xff]  ;;  %v128_v30 = vld [vmem:[%s1861_s0 + $0x150] sm:$0xff] }
  0x15   :  { %1260 = vmatpush3.bf16.msra.mxu1 %v1166_v33  ;;  %1167 = vmatpush3.bf16.msra.mxu0 %v1166_v33  ;;  %v34_v11 = vld [vmem:[%s1862_s1 + $0x40] sm:$0xff]  ;;  %v39_v15 = vld [vmem:[%s1862_s1 + $0x68] sm:$0xff]  ;;  %v129_v31 = vld [vmem:[%s1861_s0 + $0x158] sm:$0xff] }
  0x16   :  { %1253 = vmatprep.subr.bf16.mxu1 %v1168_v34  ;;  %1169 = vmatprep.subr.bf16.mxu0 %v1168_v34  ;;  %v141_v17 = vld [vmem:[%s1863_s2 + $0x28] sm:$0xff]  ;;  %v70_v19 = vld [vmem:[%s1862_s1 + $0x160] sm:$0xff]  ;;  %v146_v35 = vld [vmem:[%s1863_s2 + $0x50] sm:$0xff]  ;;  %v1196_v36 = vpack.c.bf16 %v129_v31, %v128_v30 }
  0x17   :  { %v38_v20 = vld [vmem:[%s1862_s1 + $0x60] sm:$0xff]  ;;  %v127_v22 = vld [vmem:[%s1861_s0 + $0x148] sm:$0xff]  ;;  %178 = vperm.xlu1 %1269, %v141_v17   ;;  %v147_v43 = vld [vmem:[%s1863_s2 + $0x58] sm:$0xff] }
  0x18   :  { %173 = vperm.xlu0 %1268, %v140_v7   ;;  %v126_v21 = vld [vmem:[%s1861_s0 + $0x140] sm:$0xff]  ;;  %v75_v23 = vld [vmem:[%s1862_s1 + $0x188] sm:$0xff]  ;;  %v132_v48 = vld [vmem:[%s1861_s0 + $0x170] sm:$0xff] }
  0x19   :  { %1261 = vmatpush3.bf16.msra.mxu1 %v1170_v39  ;;  %1171 = vmatpush3.bf16.msra.mxu0 %v1170_v39  ;;  %v43_v24 = vld [vmem:[%s1862_s1 + $0x88] sm:$0xff]  ;;  %v144_v25 = vld [vmem:[%s1863_s2 + $0x40] sm:$0xff]  ;;  %v1193_v27 = vpack.c.bf16 %v127_v22, %v126_v21  ;;  %v133_v49 = vld [vmem:[%s1861_s0 + $0x178] sm:$0xff] }
  0x1a   :  { %1254 = vmatprep.subr.bf16.mxu1 %v1172_v41  ;;  %1173 = vmatprep.subr.bf16.mxu0 %v1172_v41  ;;  %v74_v28 = vld [vmem:[%s1862_s1 + $0x180] sm:$0xff]  ;;  %v79_v32 = vld [vmem:[%s1862_s1 + $0x1a8] sm:$0xff]  ;;  %v580_v62 = vld [vmem:[%s1864_s4 + $0x10] sm:$0xff] }
  0x1b   :  { %v42_v29 = vld [vmem:[%s1862_s1 + $0x80] sm:$0xff]  ;;  %v47_v33 = vld [vmem:[%s1862_s1 + $0xa8] sm:$0xff]  ;;  %188 = vperm.xlu1 %1269, %v143_v26   ;;  %v581_v63 = vld [vmem:[%s1864_s4 + $0x18] sm:$0xff] }
  0x1c   :  { %183 = vperm.xlu0 %1268, %v142_v16   ;;  %v145_v34 = vld [vmem:[%s1863_s2 + $0x48] sm:$0xff]  ;;  %v78_v37 = vld [vmem:[%s1862_s1 + $0x1a0] sm:$0xff]  ;;  %v32_v4 = vld [vmem:[%s1862_s1 + $0x30] sm:$0xff] }
  0x1d   :  { %1262 = vmatpush3.bf16.msra.mxu1 %v1174_v46  ;;  %1175 = vmatpush3.bf16.msra.mxu0 %v1174_v46  ;;  %v46_v38 = vld [vmem:[%s1862_s1 + $0xa0] sm:$0xff]  ;;  %v131_v40 = vld [vmem:[%s1861_s0 + $0x168] sm:$0xff]  ;;  %v585_v7 = vld [vmem:[%s1864_s4 + $0x38] sm:$0xff] }
  0x1e   :  { %1255 = vmatprep.subr.bf16.mxu1 %v1176_v47  ;;  %1177 = vmatprep.subr.bf16.mxu0 %v1176_v47  ;;  %v130_v39 = vld [vmem:[%s1861_s0 + $0x160] sm:$0xff]  ;;  %v83_v41 = vld [vmem:[%s1862_s1 + $0x1c8] sm:$0xff]  ;;  %v36_v8 = vld [vmem:[%s1862_s1 + $0x50] sm:$0xff] }
  0x1f   :  { %v51_v42 = vld [vmem:[%s1862_s1 + $0xc8] sm:$0xff]  ;;  %198 = vperm.xlu1 %1269, %v145_v34   ;;  %v148_v44 = vld [vmem:[%s1863_s2 + $0x60] sm:$0xff]  ;;  %v1199_v45 = vpack.c.bf16 %v131_v40, %v130_v39  ;;  %v40_v12 = vld [vmem:[%s1862_s1 + $0x70] sm:$0xff] }
  0x20   :  { %193 = vperm.xlu0 %1268, %v144_v25   ;;  %v82_v46 = vld [vmem:[%s1862_s1 + $0x1c0] sm:$0xff]  ;;  %v55_v51 = vld [vmem:[%s1862_s1 + $0xe8] sm:$0xff]  ;;  %v45_v13 = vld [vmem:[%s1862_s1 + $0x98] sm:$0xff] }
  0x21   :  { %1263 = vmatpush3.bf16.msra.mxu1 %v1178_v50  ;;  %1179 = vmatpush3.bf16.msra.mxu0 %v1178_v50  ;;  %v50_v47 = vld [vmem:[%s1862_s1 + $0xc0] sm:$0xff]  ;;  %v29_v50 = vld [vmem:[%s1862_s1 + $0x18] sm:$0xff]  ;;  %v149_v52 = vld [vmem:[%s1863_s2 + $0x68] sm:$0xff] }
  0x22   :  { %1180 = vmatprep.subr.bf16.mxu1 %v1271_v57  ;;  %1207 = vmatprep.subr.bf16.mxu0 %v1271_v57  ;;  %v134_v56 = vld [vmem:[%s1861_s0 + $0x180] sm:$0xff]  ;;  %v135_v58 = vld [vmem:[%s1861_s0 + $0x188] sm:$0xff]  ;;  %v44_v16 = vld [vmem:[%s1862_s1 + $0x90] sm:$0xff] }
  0x23   :  { %208 = vperm.xlu1 %1269, %v147_v43   ;;  %v578_v59 = vld [vmem:[%s1864_s4] sm:$0xff]  ;;  %v583_v3 = vld [vmem:[%s1864_s4 + $0x28] sm:$0xff]  ;;  %v49_v17 = vld [vmem:[%s1862_s1 + $0xb8] sm:$0xff] }
  0x24   :  { %377 = vmatmul.mubr.f32.vlgmr.msra.gmra.mrb[0].mxu1 %v58_v53  ;;  %337 = vmatmul.mubr.f32.vlgmr.msra.gmra.mrb[0].mxu0 %v26_v55  ;;  %v150_v53 = vld [vmem:[%s1863_s2 + $0x70] sm:$0xff]  ;;  %v54_v55 = vld [vmem:[%s1862_s1 + $0xe0] sm:$0xff]  ;;  %v57_v22 = vld [vmem:[%s1862_s1 + $0xf8] sm:$0xff] }
  0x25   :  { %1182 = vmatpush1.bf16.msra.mxu1 %v1181_v54  ;;  %381 = vmatprep.mubr.f32.mxu1 %v63_v60  ;;  %v1202_v54 = vpack.c.bf16 %v133_v49, %v132_v48  ;;  %v579_v60 = vld [vmem:[%s1864_s4 + $0x8] sm:$0xff]  ;;  %v52_v21 = vld [vmem:[%s1862_s1 + $0xd0] sm:$0xff]  ;;  %v65_v26 = vld [vmem:[%s1862_s1 + $0x138] sm:$0xff] }
  0x26   :  { %1183 = vmatprep.subr.bf16.mxu1 %v1271_v57  ;;  %341 = vmatprep.mubr.f32.mxu0 %v31_v61  ;;  %v1205_v61 = vpack.c.bf16 %v135_v58, %v134_v56  ;;  %v60_v25 = vld [vmem:[%s1862_s1 + $0x110] sm:$0xff]  ;;  %v73_v30 = vld [vmem:[%s1862_s1 + $0x178] sm:$0xff] }
  0x27   :  { %203 = vperm.xlu0 %1268, %v146_v35   ;;  %218 = vperm.xlu1 %1269, %v149_v52   ;;  %v72_v31 = vld [vmem:[%s1862_s1 + $0x170] sm:$0xff]  ;;  %v81_v34 = vld [vmem:[%s1862_s1 + $0x1b8] sm:$0xff] }
  0x28   :  { %382 = vmatmul.mubr.f32.gmra.mrb[2].mxu1 %v62_v1  ;;  %342 = vmatmul.mubr.f32.gmra.mrb[2].mxu0 %v30_v2  ;;  %v33_v1 = vld [vmem:[%s1862_s1 + $0x38] sm:$0xff]  ;;  %v582_v2 = vld [vmem:[%s1864_s4 + $0x20] sm:$0xff]  ;;  %v80_v35 = vld [vmem:[%s1862_s1 + $0x1b0] sm:$0xff] }
  0x29   :  { %1185 = vmatpush1.bf16.msra.mxu1 %v1184_v0  ;;  %386 = vmatprep.mubr.f32.mxu1 %v67_v5  ;;  %v28_v0 = vld [vmem:[%s1862_s1 + $0x10] sm:$0xff]  ;;  %v37_v5 = vld [vmem:[%s1862_s1 + $0x58] sm:$0xff] }
  0x2a   :  { %1186 = vmatprep.subr.bf16.mxu1 %v1271_v57  ;;  %346 = vmatprep.mubr.f32.mxu0 %v35_v6  ;;  %v584_v6 = vld [vmem:[%s1864_s4 + $0x30] sm:$0xff] }
  0x2b   :  { %213 = vperm.xlu0 %1268, %v148_v44   ;;  %591 = vperm.xlu1 %1269, %v578_v59  }
  0x2c   :  { %387 = vmatmul.mubr.f32.gmra.mrb[4].mxu1 %v66_v10  ;;  %347 = vmatmul.mubr.f32.gmra.mrb[4].mxu0 %v34_v11  ;;  %v586_v10 = vld [vmem:[%s1864_s4 + $0x40] sm:$0xff]  ;;  %v587_v11 = vld [vmem:[%s1864_s4 + $0x48] sm:$0xff] }
  0x2d   :  { %1188 = vmatpush1.bf16.msra.mxu1 %v1187_v9  ;;  %391 = vmatprep.mubr.f32.mxu1 %v71_v14  ;;  %v41_v9 = vld [vmem:[%s1862_s1 + $0x78] sm:$0xff]  ;;  %v588_v14 = vld [vmem:[%s1864_s4 + $0x50] sm:$0xf] }
  0x2e   :  { %1189 = vmatprep.subr.bf16.mxu1 %v1271_v57  ;;  %351 = vmatprep.mubr.f32.mxu0 %v39_v15  ;;  %v811_v15 = vld [vmem:[%s1865_s6] sm:$0xff] }
  0x2f   :  { %223 = vperm.xlu0 %1268, %v150_v53   ;;  %601 = vperm.xlu1 %1269, %v580_v62  }
  0x30   :  { %392 = vmatmul.mubr.f32.gmra.mrb[6].mxu1 %v70_v19  ;;  %352 = vmatmul.mubr.f32.gmra.mrb[6].mxu0 %v38_v20  ;;  %v48_v19 = vld [vmem:[%s1862_s1 + $0xb0] sm:$0xff]  ;;  %v53_v20 = vld [vmem:[%s1862_s1 + $0xd8] sm:$0xff] }
  0x31   :  { %1191 = vmatpush1.bf16.msra.mxu1 %v1190_v18  ;;  %396 = vmatprep.mubr.f32.mxu1 %v75_v23  ;;  %v812_v18 = vld [vmem:[%s1865_s6 + $0x8] sm:$0x3]  ;;  %v56_v23 = vld [vmem:[%s1862_s1 + $0xf0] sm:$0xff] }
  0x32   :  { %1192 = vmatprep.subr.bf16.mxu1 %v1271_v57  ;;  %356 = vmatprep.mubr.f32.mxu0 %v43_v24  ;;  %v61_v24 = vld [vmem:[%s1862_s1 + $0x118] sm:$0xff] }
  0x33   :  { %596 = vperm.xlu0 %1268, %v579_v60   ;;  %611 = vperm.xlu1 %1269, %v582_v2  }
  0x34   :  { %397 = vmatmul.mubr.f32.gmra.mrb[8].mxu1 %v74_v28  ;;  %357 = vmatmul.mubr.f32.gmra.mrb[8].mxu0 %v42_v29  ;;  %v69_v28 = vld [vmem:[%s1862_s1 + $0x158] sm:$0xff]  ;;  %v68_v29 = vld [vmem:[%s1862_s1 + $0x150] sm:$0xff] }
  0x35   :  { %1194 = vmatpush1.bf16.msra.mxu1 %v1193_v27  ;;  %401 = vmatprep.mubr.f32.mxu1 %v79_v32  ;;  %v64_v27 = vld [vmem:[%s1862_s1 + $0x130] sm:$0xff]  ;;  %v77_v32 = vld [vmem:[%s1862_s1 + $0x198] sm:$0xff] }
  0x36   :  { %1195 = vmatprep.subr.bf16.mxu1 %v1271_v57  ;;  %361 = vmatprep.mubr.f32.mxu0 %v47_v33  ;;  %v76_v33 = vld [vmem:[%s1862_s1 + $0x190] sm:$0xff] }
  0x37   :  { %606 = vperm.xlu0 %1268, %v581_v63   ;;  %621 = vperm.xlu1 %1269, %v584_v6  }
  0x38   :  { %402 = vmatmul.mubr.f32.gmra.mrb[10].mxu1 %v78_v37  ;;  %362 = vmatmul.mubr.f32.gmra.mrb[10].mxu0 %v46_v38  ;;  %v84_v37 = vld [vmem:[%s1862_s1 + $0x1d0] sm:$0xff]  ;;  %v1273_v38 = vmov 0.0  }
  0x39   :  { %1197 = vmatpush1.bf16.msra.mxu1 %v1196_v36  ;;  %406 = vmatprep.mubr.f32.mxu1 %v83_v41  ;;  %v85_v36 = vld [vmem:[%s1862_s1 + $0x1d8] sm:$0xff] }
  0x3a   :  { %1198 = vmatprep.subr.bf16.mxu1 %v1271_v57  ;;  %366 = vmatprep.mubr.f32.mxu0 %v51_v42 }
  0x3b   :  { %616 = vperm.xlu0 %1268, %v583_v3   ;;  %631 = vperm.xlu1 %1269, %v586_v10  }
  0x3c   :  { %407 = vmatmul.mubr.f32.gmra.mrb[12].mxu1 %v82_v46  ;;  %367 = vmatmul.mubr.f32.gmra.mrb[12].mxu0 %v50_v47 }
  0x3d   :  { %1200 = vmatpush1.bf16.msra.mxu1 %v1199_v45  ;;  %915 = vmatprep.mubr.msk.f32.mxu1 %vm226_vm0, %v29_v50 }
  0x3e   :  { %1201 = vmatprep.subr.bf16.mxu1 %v1271_v57  ;;  %371 = vmatprep.mubr.f32.mxu0 %v55_v51 }
  0x3f   :  { %626 = vperm.xlu0 %1268, %v585_v7   ;;  %641 = vperm.xlu1 %1269, %v588_v14  }
  0x40   :  { %372 = vmatmul.mubr.f32.gmra.mrb[14].mxu0 %v54_v55 }
  0x41   :  { %1203 = vmatpush1.bf16.msra.mxu1 %v1202_v54  ;;  %1090 = vmatprep.mubr.msk.f32.mxu0 %vm1272_vm1, %v1273_v38 }
  0x42   :  { %1204 = vmatprep.subr.bf16.mxu1 %v1271_v57 }
  0x43   :  { %636 = vperm.xlu0 %1268, %v587_v11   ;;  %820 = vperm.xlu1 %1269, %v812_v18  }
  0x45   :  { %1206 = vmatpush1.bf16.msra.mxu1 %v1205_v61 }
  0x47   :  { %815 = vperm.xlu0 %1268, %v811_v15  }
  0x48   :  { %477 = vmatmul.mubr.f32.vlgmr.msra.gmra.mrb[14].mxu1 %v28_v0 }
  0x49   :  { %916 = vmatprep.mubr.msk.f32.mxu1 %vm226_vm0, %v33_v1 }
  0x4c   :  { %482 = vmatmul.mubr.f32.gmra.mrb[16].mxu1 %v32_v4 }
  0x4d   :  { %917 = vmatprep.mubr.msk.f32.mxu1 %vm226_vm0, %v37_v5 }
  0x50   :  { %487 = vmatmul.mubr.f32.gmra.mrb[18].mxu1 %v36_v8 }
  0x51   :  { %918 = vmatprep.mubr.msk.f32.mxu1 %vm226_vm0, %v41_v9 }
  0x54   :  { %492 = vmatmul.mubr.f32.gmra.mrb[20].mxu1 %v40_v12 }
  0x55   :  { %919 = vmatprep.mubr.msk.f32.mxu1 %vm226_vm0, %v45_v13 }
  0x58   :  { %497 = vmatmul.mubr.f32.gmra.mrb[22].mxu1 %v44_v16 }
  0x59   :  { %920 = vmatprep.mubr.msk.f32.mxu1 %vm226_vm0, %v49_v17 }
  0x5c   :  { %502 = vmatmul.mubr.f32.gmra.mrb[24].mxu1 %v48_v19 }
  0x5d   :  { %921 = vmatprep.mubr.msk.f32.mxu1 %vm226_vm0, %v53_v20 }
  0x60   :  { %507 = vmatmul.mubr.f32.gmra.mrb[26].mxu1 %v52_v21 }
  0x61   :  { %922 = vmatprep.mubr.msk.f32.mxu1 %vm226_vm0, %v57_v22 }
  0x64   :  { %512 = vmatmul.mubr.f32.gmra.mrb[28].mxu1 %v56_v23 }
  0x65   :  { %923 = vmatprep.mubr.msk.f32.mxu1 %vm226_vm0, %v61_v24 }
  0x68   :  { %517 = vmatmul.mubr.f32.gmra.mrb[30].mxu1 %v60_v25 }
  0x69   :  { %924 = vmatprep.mubr.msk.f32.mxu1 %vm226_vm0, %v65_v26 }
  0x6c   :  { %522 = vmatmul.mubr.f32.gmra.mrb[32].mxu1 %v64_v27 }
  0x6d   :  { %925 = vmatprep.mubr.msk.f32.mxu1 %vm226_vm0, %v69_v28 }
  0x70   :  { %527 = vmatmul.mubr.f32.gmra.mrb[34].mxu1 %v68_v29 }
  0x71   :  { %926 = vmatprep.mubr.msk.f32.mxu1 %vm226_vm0, %v73_v30 }
  0x74   :  { %532 = vmatmul.mubr.f32.gmra.mrb[36].mxu1 %v72_v31 }
  0x75   :  { %927 = vmatprep.mubr.msk.f32.mxu1 %vm226_vm0, %v77_v32 }
  0x78   :  { %537 = vmatmul.mubr.f32.gmra.mrb[38].mxu1 %v76_v33 }
  0x79   :  { %928 = vmatprep.mubr.msk.f32.mxu1 %vm226_vm0, %v81_v34 }
  0x7c   :  { %542 = vmatmul.mubr.f32.gmra.mrb[40].mxu1 %v80_v35 }
  0x7d   :  { %929 = vmatprep.mubr.msk.f32.mxu1 %vm226_vm0, %v85_v36 }
  0x80   :  { %547 = vmatmul.mubr.f32.gmra.mrb[42].mxu1 %v84_v37 }
  0x8e   :  { %v164_v28 = vpop.permute.xlu1 %163 }
  0x8f   :  { %v154_v20 = vpop.permute.xlu0 %153 }
  0x92   :  { %v169_v35 = vpop.permute.xlu1 %168 }
  0x93   :  { %v159_v23 = vpop.permute.xlu0 %158 }
  0xf7   :  { %v1000_v39 = vpop.f32.mrb[0].mxu1  ;;  %v976_v40 = vpop.f32.mrb[0].mxu0 }
  0xf8   :  { %v1001_v41 = vpop.f32.mrb[1].mxu1  ;;  %v977_v42 = vpop.f32.mrb[1].mxu0 }
  0xf9   :  { %v1755_v43 = vadd.f32 %v1001_v41, %v1000_v39  ;;  %v978_v44 = vadd.f32 %v977_v42, %v976_v40  ;;  %v174_v42 = vpop.permute.xlu0 %173 }
  0xfb   :  { %v1003_v45 = vpop.f32.mrb[2].mxu1  ;;  %v979_v46 = vpop.f32.mrb[2].mxu0  ;;  %v339_v22 = vadd.f32 %v978_v44, %v154_v20 }
  0xfc   :  { %v1004_v47 = vpop.f32.mrb[3].mxu1  ;;  %v980_v48 = vpop.f32.mrb[3].mxu0 }
  0xfd   :  { %v1757_v49 = vadd.f32 %v1004_v47, %v1003_v45  ;;  %v981_v50 = vadd.f32 %v980_v48, %v979_v46 }
  0xff   :  { %v1006_v51 = vpop.f32.mrb[4].mxu1  ;;  %v982_v52 = vpop.f32.mrb[4].mxu0  ;;  %v344_v27 = vadd.f32 %v981_v50, %v159_v23 }
 0x100   :  { %v1007_v53 = vpop.f32.mrb[5].mxu1  ;;  %v983_v54 = vpop.f32.mrb[5].mxu0 }
 0x101   :  { %v1759_v55 = vadd.f32 %v1007_v53, %v1006_v51  ;;  %v984_v56 = vadd.f32 %v983_v54, %v982_v52  ;;  %v179_v51 = vpop.permute.xlu1 %178 }
 0x103   :  { %v1009_v58 = vpop.f32.mrb[6].mxu1  ;;  %v985_v59 = vpop.f32.mrb[6].mxu0  ;;  %v349_v32 = vadd.f32 %v984_v56, %v164_v28 }
 0x104   :  { %v1010_v60 = vpop.f32.mrb[7].mxu1  ;;  %v986_v61 = vpop.f32.mrb[7].mxu0 }
 0x105   :  { %v1761_v62 = vadd.f32 %v1010_v60, %v1009_v58  ;;  %v987_v63 = vadd.f32 %v986_v61, %v985_v59  ;;  %v184_v59 = vpop.permute.xlu0 %183 }
 0x107   :  { %v1012_v0 = vpop.f32.mrb[8].mxu1  ;;  %v988_v1 = vpop.f32.mrb[8].mxu0  ;;  %v354_v41 = vadd.f32 %v987_v63, %v169_v35 }
 0x108   :  { %v1013_v2 = vpop.f32.mrb[9].mxu1  ;;  %v989_v3 = vpop.f32.mrb[9].mxu0 }
 0x109   :  { %v1763_v4 = vadd.f32 %v1013_v2, %v1012_v0  ;;  %v990_v5 = vadd.f32 %v989_v3, %v988_v1  ;;  %v189_v3 = vpop.permute.xlu1 %188 }
 0x10b   :  { %v1015_v6 = vpop.f32.mrb[10].mxu1  ;;  %v991_v7 = vpop.f32.mrb[10].mxu0  ;;  %v359_v47 = vadd.f32 %v990_v5, %v174_v42 }
 0x10c   :  { %v1016_v8 = vpop.f32.mrb[11].mxu1  ;;  %v992_v9 = vpop.f32.mrb[11].mxu0 }
 0x10d   :  { %v1765_v10 = vadd.f32 %v1016_v8, %v1015_v6  ;;  %v993_v11 = vadd.f32 %v992_v9, %v991_v7 }
 0x10f   :  { %v1018_v12 = vpop.f32.mrb[12].mxu1  ;;  %v994_v13 = vpop.f32.mrb[12].mxu0  ;;  %v364_v58 = vadd.f32 %v993_v11, %v179_v51 }
 0x110   :  { %v1019_v14 = vpop.f32.mrb[13].mxu1  ;;  %v995_v15 = vpop.f32.mrb[13].mxu0 }
 0x111   :  { %v1767_v16 = vadd.f32 %v1019_v14, %v1018_v12  ;;  %v996_v17 = vadd.f32 %v995_v15, %v994_v13  ;;  %v194_v12 = vpop.permute.xlu0 %193 }
 0x112   :  { %v379_v15 = vadd.f32 %v1755_v43, %v194_v12 }
 0x113   :  { %v997_v18 = vpop.f32.mrb[14].mxu0  ;;  %v369_v0 = vadd.f32 %v996_v17, %v184_v59  ;;  %v199_v17 = vpop.permute.xlu1 %198 }
 0x114   :  { %v998_v19 = vpop.f32.mrb[15].mxu0 }
 0x115   :  { %v999_v21 = vadd.f32 %v998_v19, %v997_v18 }
 0x117   :  { %v374_v9 = vadd.f32 %v999_v21, %v189_v3  ;;  %v204_v21 = vpop.permute.xlu0 %203  ;;  %v573_v3 = vld [vmem:[%s1866_s3 + $0x30] sm:$0xff] }
 0x11b   :  { %v478_v24 = vpop.f32.mrb[14].mxu1 }
 0x11c   :  { %v479_v25 = vadd.f32 %v478_v24, %v339_v22  ;;  %v480_v26 = vpop.f32.mrb[15].mxu1 }
 0x11e   :  { %v552_v33 = vmax.f32 %v479_v25, 0.0  ;;  %v384_v25 = vadd.f32 %v1757_v49, %v199_v17  ;;  %v214_v49 = vpop.permute.xlu0 %213 }
 0x11f   :  { %v483_v29 = vpop.f32.mrb[16].mxu1 }
 0x120   :  { %v484_v30 = vadd.f32 %v483_v29, %v344_v27  ;;  %v485_v31 = vpop.f32.mrb[17].mxu1  ;;  %v389_v29 = vadd.f32 %v1759_v55, %v204_v21 }
 0x121   :  { %v209_v31 = vpop.permute.xlu1 %208 }
 0x122   :  { %v553_v34 = vmax.f32 %v484_v30, 0.0 }
 0x123   :  { %v488_v36 = vpop.f32.mrb[18].mxu1 }
 0x124   :  { %v1208_v37 = vpack.c.bf16 %v553_v34, %v552_v33  ;;  %v489_v39 = vadd.f32 %v488_v36, %v349_v32  ;;  %v490_v40 = vpop.f32.mrb[19].mxu1  ;;  %v394_v36 = vadd.f32 %v1761_v62, %v209_v31  ;;  %v224_v62 = vpop.permute.xlu0 %223 }
 0x126   :  { %1209 = vmatpush3.bf16.msra.mxu0 %v1208_v37  ;;  %v554_v48 = vmax.f32 %v489_v39, 0.0 }
 0x127   :  { %v493_v44 = vpop.f32.mrb[20].mxu1  ;;  %1210 = vmatprep.subr.bf16.mxu0 %v1271_v57 }
 0x128   :  { %v494_v45 = vadd.f32 %v493_v44, %v354_v41  ;;  %v495_v46 = vpop.f32.mrb[21].mxu1  ;;  %v399_v41 = vadd.f32 %v1763_v4, %v214_v49  ;;  %v219_v44 = vpop.permute.xlu1 %218 }
 0x12a   :  { %v555_v50 = vmax.f32 %v494_v45, 0.0 }
 0x12b   :  { %v498_v52 = vpop.f32.mrb[22].mxu1 }
 0x12c   :  { %v1211_v53 = vpack.c.bf16 %v555_v50, %v554_v48  ;;  %v499_v54 = vadd.f32 %v498_v52, %v359_v47  ;;  %v500_v56 = vpop.f32.mrb[23].mxu1  ;;  %v404_v50 = vadd.f32 %v1765_v10, %v219_v44  ;;  %v567_v10 = vld [vmem:[%s1866_s3] sm:$0xff] }
 0x12e   :  { %1212 = vmatpush3.bf16.msra.mxu0 %v1211_v53  ;;  %v556_v1 = vmax.f32 %v499_v54, 0.0  ;;  %v409_v54 = vadd.f32 %v1767_v16, %v224_v62  ;;  %v569_v16 = vld [vmem:[%s1866_s3 + $0x10] sm:$0xff] }
 0x12f   :  { %v503_v60 = vpop.f32.mrb[24].mxu1  ;;  %1213 = vmatprep.subr.bf16.mxu0 %v1271_v57 }
 0x130   :  { %v504_v61 = vadd.f32 %v503_v60, %v364_v58  ;;  %v505_v63 = vpop.f32.mrb[25].mxu1 }
 0x132   :  { %v557_v2 = vmax.f32 %v504_v61, 0.0 }
 0x133   :  { %v508_v5 = vpop.f32.mrb[26].mxu1 }
 0x134   :  { %v1214_v6 = vpack.c.bf16 %v557_v2, %v556_v1  ;;  %v509_v7 = vadd.f32 %v508_v5, %v369_v0  ;;  %v510_v8 = vpop.f32.mrb[27].mxu1  ;;  %v570_v0 = vld [vmem:[%s1866_s3 + $0x18] sm:$0xff]  ;;  %v571_v1 = vld [vmem:[%s1866_s3 + $0x20] sm:$0xff]  ;;  %v572_v2 = vld [vmem:[%s1866_s3 + $0x28] sm:$0xff] }
 0x135   :  { %v574_v5 = vld [vmem:[%s1866_s3 + $0x38] sm:$0xff]  ;;  %v577_v8 = vld [vmem:[%s1866_s3 + $0x50] sm:$0xf] }
 0x136   :  { %1215 = vmatpush3.bf16.msra.mxu0 %v1214_v6  ;;  %v558_v18 = vmax.f32 %v509_v7, 0.0  ;;  %v575_v6 = vld [vmem:[%s1866_s3 + $0x40] sm:$0xff]  ;;  %v576_v7 = vld [vmem:[%s1866_s3 + $0x48] sm:$0xff] }
 0x137   :  { %v513_v13 = vpop.f32.mrb[28].mxu1  ;;  %1216 = vmatprep.subr.bf16.mxu0 %v1271_v57 }
 0x138   :  { %v514_v11 = vadd.f32 %v513_v13, %v374_v9  ;;  %v515_v14 = vpop.f32.mrb[29].mxu1  ;;  %v809_v9 = vld [vmem:[%s1867_s5] sm:$0xff] }
 0x13a   :  { %v559_v19 = vmax.f32 %v514_v11, 0.0  ;;  %v592_v11 = vpop.permute.xlu1 %591 }
 0x13b   :  { %v518_v20 = vpop.f32.mrb[30].mxu1 }
 0x13c   :  { %v1217_v22 = vpack.c.bf16 %v559_v19, %v558_v18  ;;  %v519_v23 = vadd.f32 %v518_v20, %v379_v15  ;;  %v520_v24 = vpop.f32.mrb[31].mxu1  ;;  %v597_v15 = vpop.permute.xlu0 %596 }
 0x13e   :  { %1218 = vmatpush3.bf16.msra.mxu0 %v1217_v22  ;;  %v560_v30 = vmax.f32 %v519_v23, 0.0 }
 0x13f   :  { %v523_v26 = vpop.f32.mrb[32].mxu1  ;;  %1219 = vmatprep.subr.bf16.mxu0 %v1271_v57 }
 0x140   :  { %v524_v27 = vadd.f32 %v523_v26, %v384_v25  ;;  %v525_v28 = vpop.f32.mrb[33].mxu1  ;;  %v602_v25 = vpop.permute.xlu1 %601 }
 0x141   :  { %v607_v26 = vpop.permute.xlu0 %606 }
 0x142   :  { %v561_v43 = vmax.f32 %v524_v27, 0.0 }
 0x143   :  { %v528_v32 = vpop.f32.mrb[34].mxu1 }
 0x144   :  { %v1220_v33 = vpack.c.bf16 %v561_v43, %v560_v30  ;;  %v529_v34 = vadd.f32 %v528_v32, %v389_v29  ;;  %v530_v35 = vpop.f32.mrb[35].mxu1 }
 0x146   :  { %1221 = vmatpush3.bf16.msra.mxu0 %v1220_v33  ;;  %v562_v42 = vmax.f32 %v529_v34, 0.0  ;;  %v612_v34 = vpop.permute.xlu1 %611 }
 0x147   :  { %v533_v37 = vpop.f32.mrb[36].mxu1  ;;  %1222 = vmatprep.subr.bf16.mxu0 %v1271_v57 }
 0x148   :  { %v534_v39 = vadd.f32 %v533_v37, %v394_v36  ;;  %v535_v40 = vpop.f32.mrb[37].mxu1  ;;  %v617_v36 = vpop.permute.xlu0 %616 }
 0x14a   :  { %v563_v55 = vmax.f32 %v534_v39, 0.0 }
 0x14b   :  { %v538_v45 = vpop.f32.mrb[38].mxu1 }
 0x14c   :  { %v1223_v46 = vpack.c.bf16 %v563_v55, %v562_v42  ;;  %v539_v47 = vadd.f32 %v538_v45, %v399_v41  ;;  %v540_v48 = vpop.f32.mrb[39].mxu1  ;;  %v622_v45 = vpop.permute.xlu1 %621 }
 0x14e   :  { %1224 = vmatpush3.bf16.msra.mxu0 %v1223_v46  ;;  %v564_v56 = vmax.f32 %v539_v47, 0.0  ;;  %v627_v47 = vpop.permute.xlu0 %626 }
 0x14f   :  { %v543_v51 = vpop.f32.mrb[40].mxu1  ;;  %1225 = vmatprep.subr.bf16.mxu0 %v1271_v57  ;;  %v568_v57 = vld [vmem:[%s1866_s3 + $0x8] sm:$0xff] }
 0x150   :  { %v544_v52 = vadd.f32 %v543_v51, %v404_v50  ;;  %v545_v53 = vpop.f32.mrb[41].mxu1 }
 0x152   :  { %v565_v4 = vmax.f32 %v544_v52, 0.0 }
 0x153   :  { %v548_v58 = vpop.f32.mrb[42].mxu1 }
 0x154   :  { %v1226_v59 = vpack.c.bf16 %v565_v4, %v564_v56  ;;  %v549_v60 = vadd.f32 %v548_v58, %v409_v54  ;;  %v550_v61 = vpop.f32.mrb[43].mxu1  ;;  %v632_v4 = vpop.permute.xlu1 %631 }
 0x156   :  { %1227 = vmatpush3.bf16.msra.mxu0 %v1226_v59  ;;  %v566_v63 = vmax.f32 %v549_v60, 0.0  ;;  %v637_v59 = vpop.permute.xlu0 %636 }
 0x157   :  { %1088 = vmatprep.subr.mxu0 %v1273_v38 }
 0x15a   :  { %1089 = vmatpush3.msra.mxu0 %v566_v63 }
 0x15b   :  { %1091 = vmatmul.mubr.msk.f32.vlgmr.msra.gmra.mrb[16].mxu0 %vm644_vm2, %v567_v10 }
 0x15c   :  { %1093 = vmatprep.mubr.msk.f32.mxu0 %vm1272_vm1, %v1273_v38 }
 0x15f   :  { %1094 = vmatmul.mubr.msk.f32.gmra.mrb[18].mxu0 %vm644_vm2, %v568_v57 }
 0x160   :  { %1096 = vmatprep.mubr.msk.f32.mxu0 %vm1272_vm1, %v1273_v38 }
 0x163   :  { %1097 = vmatmul.mubr.msk.f32.gmra.mrb[20].mxu0 %vm644_vm2, %v569_v16  ;;  %v642_v16 = vpop.permute.xlu1 %641 }
 0x164   :  { %1099 = vmatprep.mubr.msk.f32.mxu0 %vm1272_vm1, %v1273_v38 }
 0x167   :  { %1100 = vmatmul.mubr.msk.f32.gmra.mrb[22].mxu0 %vm644_vm2, %v570_v0 }
 0x168   :  { %1102 = vmatprep.mubr.msk.f32.mxu0 %vm1272_vm1, %v1273_v38 }
 0x16b   :  { %1103 = vmatmul.mubr.msk.f32.gmra.mrb[24].mxu0 %vm644_vm2, %v571_v1 }
 0x16c   :  { %1105 = vmatprep.mubr.msk.f32.mxu0 %vm1272_vm1, %v1273_v38 }
 0x16f   :  { %1106 = vmatmul.mubr.msk.f32.gmra.mrb[26].mxu0 %vm644_vm2, %v572_v2 }
 0x170   :  { %1108 = vmatprep.mubr.msk.f32.mxu0 %vm1272_vm1, %v1273_v38 }
 0x173   :  { %1109 = vmatmul.mubr.msk.f32.gmra.mrb[28].mxu0 %vm644_vm2, %v573_v3 }
 0x174   :  { %1111 = vmatprep.mubr.msk.f32.mxu0 %vm1272_vm1, %v1273_v38 }
 0x177   :  { %1112 = vmatmul.mubr.msk.f32.gmra.mrb[30].mxu0 %vm644_vm2, %v574_v5 }
 0x178   :  { %1114 = vmatprep.mubr.msk.f32.mxu0 %vm1272_vm1, %v1273_v38 }
 0x17b   :  { %1115 = vmatmul.mubr.msk.f32.gmra.mrb[32].mxu0 %vm644_vm2, %v575_v6  ;;  %v810_v6 = vld [vmem:[%s1867_s5 + $0x8] sm:$0x3] }
 0x17c   :  { %1117 = vmatprep.mubr.msk.f32.mxu0 %vm1272_vm1, %v1273_v38 }
 0x17f   :  { %1118 = vmatmul.mubr.msk.f32.gmra.mrb[34].mxu0 %vm644_vm2, %v576_v7  ;;  %v821_v7 = vpop.permute.xlu1 %820 }
 0x180   :  { %1120 = vmatprep.mubr.msk.f32.mxu0 %vm1272_vm1, %v1273_v38 }
 0x183   :  { %1121 = vmatmul.mubr.msk.f32.gmra.mrb[36].mxu0 %vm644_vm2, %v577_v8 }
 0x184   :  { %1145 = vmatprep.mubr.msk.f32.mxu0 %vm823_vm3, %v809_v9  ;;  %v816_v9 = vpop.permute.xlu0 %815 }
 0x22e   :  { %v744_v12 = vpop.f32.mrb[16].mxu0 }
 0x22f   :  { %v1092_v13 = vpop.f32.mrb[17].mxu0  ;;  %v745_v14 = vadd.f32 %v744_v12, %v592_v11 }
 0x231   :  { %v798_v17 = vmax.f32 %v745_v14, 0.0 }
 0x232   :  { %v749_v18 = vpop.f32.mrb[18].mxu0 }
 0x233   :  { %v750_v38 = vadd.f32 %v749_v18, %v597_v15  ;;  %v1095_v19 = vpop.f32.mrb[19].mxu0 }
 0x235   :  { %v799_v20 = vmax.f32 %v750_v38, 0.0 }
 0x236   :  { %v754_v22 = vpop.f32.mrb[20].mxu0 }
 0x237   :  { %v1228_v23 = vpack.c.bf16 %v799_v20, %v798_v17  ;;  %v1098_v24 = vpop.f32.mrb[21].mxu0  ;;  %v755_v21 = vadd.f32 %v754_v22, %v602_v25 }
 0x239   :  { %1229 = vmatprep.subr.bf16.mxu0 %v1228_v23  ;;  %v800_v30 = vmax.f32 %v755_v21, 0.0 }
 0x23a   :  { %v759_v27 = vpop.f32.mrb[22].mxu0  ;;  %1231 = vmatpush3.bf16.msra.mxu0 %v1228_v23 }
 0x23b   :  { %v760_v28 = vadd.f32 %v759_v27, %v607_v26  ;;  %v1101_v29 = vpop.f32.mrb[23].mxu0 }
 0x23d   :  { %v801_v43 = vmax.f32 %v760_v28, 0.0 }
 0x23e   :  { %v764_v31 = vpop.f32.mrb[24].mxu0 }
 0x23f   :  { %v1232_v32 = vpack.c.bf16 %v801_v43, %v800_v30  ;;  %v1104_v33 = vpop.f32.mrb[25].mxu0  ;;  %v765_v35 = vadd.f32 %v764_v31, %v612_v34 }
 0x241   :  { %1233 = vmatprep.subr.bf16.mxu0 %v1232_v32  ;;  %v802_v40 = vmax.f32 %v765_v35, 0.0 }
 0x242   :  { %v769_v49 = vpop.f32.mrb[26].mxu0  ;;  %1235 = vmatpush3.bf16.msra.mxu0 %v1232_v32 }
 0x243   :  { %v770_v37 = vadd.f32 %v769_v49, %v617_v36  ;;  %v1107_v39 = vpop.f32.mrb[27].mxu0 }
 0x245   :  { %v803_v41 = vmax.f32 %v770_v37, 0.0 }
 0x246   :  { %v774_v42 = vpop.f32.mrb[28].mxu0 }
 0x247   :  { %v1236_v55 = vpack.c.bf16 %v803_v41, %v802_v40  ;;  %v1110_v44 = vpop.f32.mrb[29].mxu0  ;;  %v775_v46 = vadd.f32 %v774_v42, %v622_v45 }
 0x249   :  { %1237 = vmatprep.subr.bf16.mxu0 %v1236_v55  ;;  %v804_v51 = vmax.f32 %v775_v46, 0.0 }
 0x24a   :  { %v779_v48 = vpop.f32.mrb[30].mxu0  ;;  %1239 = vmatpush3.bf16.msra.mxu0 %v1236_v55 }
 0x24b   :  { %v780_v50 = vadd.f32 %v779_v48, %v627_v47  ;;  %v1113_v62 = vpop.f32.mrb[31].mxu0 }
 0x24d   :  { %v805_v52 = vmax.f32 %v780_v50, 0.0 }
 0x24e   :  { %v784_v53 = vpop.f32.mrb[32].mxu0 }
 0x24f   :  { %v1240_v54 = vpack.c.bf16 %v805_v52, %v804_v51  ;;  %v1116_v56 = vpop.f32.mrb[33].mxu0  ;;  %v785_v58 = vadd.f32 %v784_v53, %v632_v4 }
 0x251   :  { %1241 = vmatprep.subr.bf16.mxu0 %v1240_v54  ;;  %v806_v10 = vmax.f32 %v785_v58, 0.0 }
 0x252   :  { %v789_v60 = vpop.f32.mrb[34].mxu0  ;;  %1243 = vmatpush3.bf16.msra.mxu0 %v1240_v54 }
 0x253   :  { %v790_v61 = vadd.f32 %v789_v60, %v637_v59  ;;  %v1119_v63 = vpop.f32.mrb[35].mxu0 }
 0x255   :  { %v807_v57 = vmax.f32 %v790_v61, 0.0 }
 0x256   :  { %v794_v0 = vpop.f32.mrb[36].mxu0 }
 0x257   :  { %v1244_v1 = vpack.c.bf16 %v807_v57, %v806_v10  ;;  %v795_v2 = vadd.f32 %v794_v0, %v642_v16  ;;  %v1122_v3 = vpop.f32.mrb[37].mxu0 }
 0x259   :  { %v808_v5 = vmax.f32 %v795_v2, 0.0  ;;  %1245 = vmatprep.subr.bf16.mxu0 %v1244_v1 }
 0x25a   :  { %1247 = vmatpush3.bf16.msra.mxu0 %v1244_v1 }
 0x25b   :  { %1143 = vmatprep.subr.msk.mxu0 %vm830_vm4, %v808_v5 }
 0x25e   :  { %1144 = vmatpush3.msk.msra.mxu0 %vm830_vm4, %v808_v5 }
 0x25f   :  { %1146 = vmatmul.mubr.msk.f32.vlgmr.msra.gmra.mrb[38].mxu0 %vm823_vm3, %v810_v6 }
 0x332   :  { %v1147_v8 = vpop.f32.mrb[38].mxu0 }
 0x333   :  { %v906_v12 = vadd.f32 %v1147_v8, %v821_v7  ;;  %v900_v13 = vpop.f32.mrb[39].mxu0 }
 0x334   :  { %v901_v11 = vadd.f32 %v900_v13, %v816_v9 }
 0x335   :  { %910 = vst [vmem:[%s1868_s7 + $0x8] sm:$0x3] %v906_v12 }
 0x336   :  { %909 = vst [vmem:[%s1868_s7] sm:$0xff] %v901_v11 }

</bundles_post_ra>
